<compile_context>
chip_gen: v7x
topology: tpu7x:2x2x1
jax: 0.10.0
libtpu: 0.0.40
codegen_flags: <defaults>
</compile_context>

<pallas_src>
import jax
import jax.numpy as jnp
from jax.experimental import pallas as pl
from jax.experimental.pallas import tpu as pltpu

# ----------------------------- config ---------------------------------------
VOCAB = 128
TYPE_VOCAB = 2
MAX_POS = 32
HIDDEN = 64
N_HEADS = 4
HEAD_DIM = HIDDEN // N_HEADS
INTERMEDIATE = 4 * HIDDEN
N_LAYERS = 2
LN_EPS = 1e-12

BATCH = 2
SEQ = 8


# ----------------------------- in-kernel helpers ----------------------------
def _ln(x, g, b):
    mu = jnp.mean(x, axis=-1, keepdims=True)
    xc = x - mu
    var = jnp.mean(xc * xc, axis=-1, keepdims=True)
    return xc * jax.lax.rsqrt(var + LN_EPS) * g + b


def _gelu(x):
    # TODO(synk): HF BERT uses exact erf-GELU; tanh approximation used here
    # (the pure-JAX reference below uses the same approximation).
    return 0.5 * x * (1.0 + jnp.tanh(0.7978845608028654 * (x + 0.044715 * x * x * x)))


# ----------------------------- fused BERT kernel ----------------------------
def _bert_kernel(emb_ref, emb_g_ref, emb_b_ref, mask_ref,
                 wqkv_ref, bqkv_ref, wo_ref, bo_ref, ln1_g_ref, ln1_b_ref,
                 wi_ref, bi_ref, wo2_ref, bo2_ref, ln2_g_ref, ln2_b_ref,
                 pool_w_ref, pool_b_ref, fc_w_ref, fc_b_ref,
                 hid_ref, probs_ref, head_ref):
    """grid = (layer,).  All batch rows live in one (B*S, H) block.

    hid_ref (B*S, H) is the residual stream; its block index ignores the layer
    axis so it stays resident in VMEM across the sequential ("arbitrary")
    layer steps.  Invariant: do NOT reorder the grid or mark it "parallel"."""
    layer = pl.program_id(0)
    n_layers = pl.num_programs(0)
    bf16 = jnp.bfloat16
    f32 = jnp.float32

    # --- embeddings LayerNorm, only at the first layer step ---
    @pl.when(layer == 0)
    def _():
        hid_ref[...] = _ln(emb_ref[...], emb_g_ref[...], emb_b_ref[...])

    x = hid_ref[...]                                     # (B*S, H) f32

    # --- fused QKV projection for ALL batch rows: (B*S,H)@(H,3H), bf16 MXU ---
    qkv = jnp.dot(x.astype(bf16), wqkv_ref[...],
                  preferred_element_type=f32) + bqkv_ref[...]

    mask = mask_ref[...]                                 # (B, S) additive bias (f32)
    scale = 1.0 / (HEAD_DIM ** 0.5)

    # --- multi-head self-attention, unrolled over (batch, head) ---
    ctx_rows = []
    prob_rows = []
    for b in range(BATCH):
        r0 = b * SEQ
        qkv_b = qkv[r0:r0 + SEQ, :]                      # (S, 3H) f32
        bias_b = mask[b:b + 1, :]                        # (1, S)
        ctx_heads = []
        prob_heads = []
        for h in range(N_HEADS):
            q = qkv_b[:, h * HEAD_DIM:(h + 1) * HEAD_DIM]
            k = qkv_b[:, HIDDEN + h * HEAD_DIM:HIDDEN + (h + 1) * HEAD_DIM]
            v = qkv_b[:, 2 * HIDDEN + h * HEAD_DIM:2 * HIDDEN + (h + 1) * HEAD_DIM]
            # q @ k^T without an explicit transpose (contract on last dims)
            s = jax.lax.dot_general(q.astype(bf16), k.astype(bf16),
                                    (((1,), (1,)), ((), ())),
                                    preferred_element_type=f32) * scale + bias_b
            s = s - jnp.max(s, axis=-1, keepdims=True)
            e = jnp.exp(s)
            p = e * pl.reciprocal(jnp.sum(e, axis=-1, keepdims=True), approx=True)
            prob_heads.append(p)                         # (S, S) f32
            ctx_heads.append(jnp.dot(p.astype(bf16), v.astype(bf16),
                                     preferred_element_type=f32))       # (S, D)
        ctx_rows.append(jnp.concatenate(ctx_heads, axis=-1))            # (S, H)
        prob_rows.append(jnp.concatenate(prob_heads, axis=-1))          # (S, NH*S)

    # single lane-wider store of the attention probs for this layer
    probs_ref[...] = jnp.concatenate(prob_rows, axis=0)                 # (B*S, NH*S)

    # --- fused attention output projection: one (B*S,H)@(H,H) matmul ---
    ctx = jnp.concatenate(ctx_rows, axis=0)                             # (B*S, H)
    attn_out = jnp.dot(ctx.astype(bf16), wo_ref[...],
                       preferred_element_type=f32) + bo_ref[...]
    h1 = _ln(attn_out + x, ln1_g_ref[...], ln1_b_ref[...])              # add & LN

    # --- feed-forward ---
    inter = jnp.dot(h1.astype(bf16), wi_ref[...],
                    preferred_element_type=f32) + bi_ref[...]
    inter = _gelu(inter)
    ffn = jnp.dot(inter.astype(bf16), wo2_ref[...],
                  preferred_element_type=f32) + bo2_ref[...]
    h2 = _ln(ffn + h1, ln2_g_ref[...], ln2_b_ref[...])                  # add & LN

    hid_ref[...] = h2                                    # residual carry / last_hidden

    # --- pooler (tanh on CLS) + classifier (sigmoid), fused at the last step ---
    @pl.when(layer == n_layers - 1)
    def _():
        cls = jnp.concatenate(
            [h2[b * SEQ:b * SEQ + 1, :] for b in range(BATCH)], axis=0)  # (B, H)
        pooled = jnp.tanh(jnp.dot(cls.astype(bf16), pool_w_ref[...],
                                  preferred_element_type=f32) + pool_b_ref[...])
        # fc(H -> 1) as a lane reduction (avoids a width-1 matmul)
        logit = jnp.sum(pooled * fc_w_ref[...], axis=-1, keepdims=True) + fc_b_ref[...]
        sig = pl.reciprocal(1.0 + jnp.exp(-logit), approx=True)          # sigmoid
        # pack pooled (B,H) and sigmoid (B,1 broadcast) into one (B, 2H) row
        head_ref[...] = jnp.concatenate(
            [pooled, jnp.broadcast_to(sig, (BATCH, HIDDEN))], axis=-1)


# ----------------------------- parameter init -------------------------------
def init_params(key):
    ks = jax.random.split(key, 10)

    def nrm(k, shape, scale=0.02):
        return (scale * jax.random.normal(k, shape)).astype(jnp.float32)

    L, H, I = N_LAYERS, HIDDEN, INTERMEDIATE
    p = {}
    p["word_emb"] = nrm(ks[0], (VOCAB, H))
    p["pos_emb"] = nrm(ks[1], (MAX_POS, H))
    p["type_emb"] = nrm(ks[2], (TYPE_VOCAB, H))
    p["emb_ln_g"] = jnp.ones((1, H), jnp.float32)
    p["emb_ln_b"] = jnp.zeros((1, H), jnp.float32)

    # per-layer weights stacked with a leading layer axis; Q|K|V fused.
    p["wqkv"] = nrm(ks[3], (L, H, 3 * H))
    p["bqkv"] = jnp.zeros((L, 1, 3 * H), jnp.float32)
    p["wo"] = nrm(ks[4], (L, H, H))
    p["bo"] = jnp.zeros((L, 1, H), jnp.float32)
    p["ln1_g"] = jnp.ones((L, 1, H), jnp.float32)
    p["ln1_b"] = jnp.zeros((L, 1, H), jnp.float32)
    p["wi"] = nrm(ks[5], (L, H, I))
    p["bi"] = jnp.zeros((L, 1, I), jnp.float32)
    p["wo2"] = nrm(ks[6], (L, I, H))
    p["bo2"] = jnp.zeros((L, 1, H), jnp.float32)
    p["ln2_g"] = jnp.ones((L, 1, H), jnp.float32)
    p["ln2_b"] = jnp.zeros((L, 1, H), jnp.float32)

    p["pool_w"] = nrm(ks[7], (H, H))
    p["pool_b"] = jnp.zeros((1, H), jnp.float32)
    p["fc_w"] = nrm(ks[8], (1, H))       # row form of nn.Linear(H, 1).weight
    p["fc_b"] = jnp.zeros((1, 1), jnp.float32)
    return p


# ----------------------------- forward --------------------------------------
def model_forward(params, input_ids, attention_mask, token_type_ids):
    B, S = input_ids.shape
    H, I, L, NH = HIDDEN, INTERMEDIATE, N_LAYERS, N_HEADS

    # --- embeddings (gathers stay in JAX) ---
    emb = (
        jnp.take(params["word_emb"], input_ids, axis=0)
        + params["pos_emb"][None, :S, :]
        + jnp.take(params["type_emb"], token_type_ids, axis=0)
    ).reshape(B * S, H).astype(jnp.float32)

    # additive extended attention mask, HF-BERT convention
    mask_bias = (1.0 - attention_mask.astype(jnp.float32)) * -10000.0      # (B, S)

    bf = lambda w: w.astype(jnp.bfloat16)   # matmul weights in bf16 (halves DMA)

    def const_spec(shp):
        n = len(shp)
        return pl.BlockSpec(shp, lambda l, _n=n: (0,) * _n)

    def per_layer(shp2):  # stacked (L, *shp2), one layer slab per step
        n = len(shp2)
        return pl.BlockSpec((None,) + shp2, lambda l, _n=n: (l,) + (0,) * _n)

    in_specs = [
        const_spec((B * S, H)),                                  # emb (all rows)
        const_spec((1, H)), const_spec((1, H)),                  # emb LN gamma/beta
        const_spec((B, S)),                                      # mask bias
        per_layer((H, 3 * H)), per_layer((1, 3 * H)),            # wqkv, bqkv
        per_layer((H, H)), per_layer((1, H)),                    # wo, bo
        per_layer((1, H)), per_layer((1, H)),                    # ln1 gamma/beta
        per_layer((H, I)), per_layer((1, I)),                    # wi, bi
        per_layer((I, H)), per_layer((1, H)),                    # wo2, bo2
        per_layer((1, H)), per_layer((1, H)),                    # ln2 gamma/beta
        const_spec((H, H)), const_spec((1, H)),                  # pooler w/b
        const_spec((1, H)), const_spec((1, 1)),                  # fc w/b
    ]
    out_shape = (
        jax.ShapeDtypeStruct((B * S, H), jnp.float32),           # last_hidden (flat)
        jax.ShapeDtypeStruct((L, B * S, NH * S), jnp.float32),   # attn probs (wide)
        jax.ShapeDtypeStruct((B, 2 * H), jnp.float32),           # pooled | sigmoid(fc)
    )
    out_specs = (
        pl.BlockSpec((B * S, H), lambda l: (0, 0)),              # revisited over l
        pl.BlockSpec((None, B * S, NH * S), lambda l: (l, 0, 0)),
        pl.BlockSpec((B, 2 * H), lambda l: (0, 0)),              # written at last step
    )

    hid, probs_flat, head = pl.pallas_call(
        _bert_kernel,
        out_shape=out_shape,
        grid=(L,),
        in_specs=in_specs,
        out_specs=out_specs,
        compiler_params=pltpu.CompilerParams(
            dimension_semantics=("arbitrary",)),                 # residual carry over l
    )(
        emb, params["emb_ln_g"], params["emb_ln_b"], mask_bias,
        bf(params["wqkv"]), params["bqkv"], bf(params["wo"]), params["bo"],
        params["ln1_g"], params["ln1_b"], bf(params["wi"]), params["bi"],
        bf(params["wo2"]), params["bo2"], params["ln2_g"], params["ln2_b"],
        bf(params["pool_w"]), params["pool_b"], params["fc_w"], params["fc_b"],
    )

    last_hidden = hid.reshape(B, S, H)                           # output[0]
    pooled = head[:, :H]                                         # output[1]
    out1 = head[:, H:H + 1]                                      # sigmoid(fc(pooled))
    # (L, B*S, NH*S) -> (L, B, S, NH, S) -> (L, B, NH, S, S)   (JAX-side, cheap)
    probs = probs_flat.reshape(L, B, S, NH, S).transpose(0, 1, 3, 2, 4)
    all_attentions = tuple(probs[i] for i in range(L))           # output_attentions=True

    bert_output = (last_hidden, pooled, all_attentions)
    return out1, bert_output


# ----------------------------- pure-JAX reference ----------------------------
def _reference_forward(params, input_ids, attention_mask, token_type_ids):
    B, S = input_ids.shape
    h = (jnp.take(params["word_emb"], input_ids, axis=0)
         + params["pos_emb"][None, :S, :]
         + jnp.take(params["type_emb"], token_type_ids, axis=0))

    def ln(x, g, b):
        mu = jnp.mean(x, -1, keepdims=True)
        var = jnp.mean((x - mu) ** 2, -1, keepdims=True)
        return (x - mu) * jax.lax.rsqrt(var + LN_EPS) * g + b

    h = ln(h, params["emb_ln_g"], params["emb_ln_b"])
    mask_bias = ((1.0 - attention_mask.astype(jnp.float32)) * -10000.0)[:, None, None, :]
    attns = []
    for l in range(N_LAYERS):
        qkv = jnp.einsum("bsh,hk->bsk", h, params["wqkv"][l]) + params["bqkv"][l]
        q, k, v = jnp.split(qkv, 3, axis=-1)

        def heads(t):
            return t.reshape(B, S, N_HEADS, HEAD_DIM).transpose(0, 2, 1, 3)

        q, k, v = heads(q), heads(k), heads(v)
        s = jnp.einsum("bnqd,bnkd->bnqk", q, k) / (HEAD_DIM ** 0.5) + mask_bias
        p = jax.nn.softmax(s, axis=-1)
        attns.append(p)
        ctx = jnp.einsum("bnqk,bnkd->bnqd", p, v).transpose(0, 2, 1, 3).reshape(B, S, HIDDEN)
        attn_out = ctx @ params["wo"][l] + params["bo"][l]
        h1 = ln(attn_out + h, params["ln1_g"][l], params["ln1_b"][l])
        inter = h1 @ params["wi"][l] + params["bi"][l]
        inter = 0.5 * inter * (1.0 + jnp.tanh(0.7978845608028654 * (inter + 0.044715 * inter ** 3)))
        ffn = inter @ params["wo2"][l] + params["bo2"][l]
        h = ln(ffn + h1, params["ln2_g"][l], params["ln2_b"][l])
    cls = h[:, 0, :]
    pooled = jnp.tanh(cls @ params["pool_w"] + params["pool_b"])
    out1 = jax.nn.sigmoid(jnp.sum(pooled * params["fc_w"], -1, keepdims=True) + params["fc_b"])
    return out1, (h, pooled, tuple(attns))


# ----------------------------- main ------------------------------------------
if __name__ == "__main__":
    key = jax.random.PRNGKey(0)
    kp, kids, ktype = jax.random.split(key, 3)

    params = init_params(kp)

    input_ids = jax.random.randint(kids, (BATCH, SEQ), 0, VOCAB, dtype=jnp.int32)
    token_type_ids = jax.random.randint(ktype, (BATCH, SEQ), 0, TYPE_VOCAB, dtype=jnp.int32)
    attention_mask = jnp.ones((BATCH, SEQ), jnp.int32).at[1, SEQ - 2:].set(0)  # pad tail

    out1, bert_output = jax.jit(model_forward)(params, input_ids, attention_mask, token_type_ids)
    jax.block_until_ready(out1)
    jax.block_until_ready(bert_output)

    # shape checks
    assert out1.shape == (BATCH, 1)
    assert bert_output[0].shape == (BATCH, SEQ, HIDDEN)
    assert bert_output[1].shape == (BATCH, HIDDEN)
    assert len(bert_output[2]) == N_LAYERS
    assert bert_output[2][0].shape == (BATCH, N_HEADS, SEQ, SEQ)
    assert bool(jnp.all((out1 > 0.0) & (out1 < 1.0)))
    assert bool(jnp.all(jnp.isfinite(bert_output[0])))

    # numeric check against pure-JAX f32 reference (kernel uses bf16 matmuls)
    r_out1, (r_hid, r_pool, r_attn) = jax.jit(_reference_forward)(
        params, input_ids, attention_mask, token_type_ids)
    tol = 2e-2
    assert float(jnp.max(jnp.abs(out1 - r_out1))) < tol
    assert float(jnp.max(jnp.abs(bert_output[0] - r_hid))) < tol
    assert float(jnp.max(jnp.abs(bert_output[1] - r_pool))) < tol
    for a, b in zip(bert_output[2], r_attn):
        assert float(jnp.max(jnp.abs(a - b))) < tol

    print("KERNEL_OK")
</pallas_src>

<mosaic_0001>
module attributes {stable_mosaic.version = 11 : i64} {
  func.func @_bert_kernel(%arg0: i32, %arg1: memref<16x64xf32, #tpu.memory_space<vmem>>, %arg2: memref<1x64xf32, #tpu.memory_space<vmem>>, %arg3: memref<1x64xf32, #tpu.memory_space<vmem>>, %arg4: memref<2x8xf32, #tpu.memory_space<vmem>>, %arg5: memref<1x64x192xbf16, #tpu.memory_space<vmem>>, %arg6: memref<1x1x192xf32, #tpu.memory_space<vmem>>, %arg7: memref<1x64x64xbf16, #tpu.memory_space<vmem>>, %arg8: memref<1x1x64xf32, #tpu.memory_space<vmem>>, %arg9: memref<1x1x64xf32, #tpu.memory_space<vmem>>, %arg10: memref<1x1x64xf32, #tpu.memory_space<vmem>>, %arg11: memref<1x64x256xbf16, #tpu.memory_space<vmem>>, %arg12: memref<1x1x256xf32, #tpu.memory_space<vmem>>, %arg13: memref<1x256x64xbf16, #tpu.memory_space<vmem>>, %arg14: memref<1x1x64xf32, #tpu.memory_space<vmem>>, %arg15: memref<1x1x64xf32, #tpu.memory_space<vmem>>, %arg16: memref<1x1x64xf32, #tpu.memory_space<vmem>>, %arg17: memref<64x64xbf16, #tpu.memory_space<vmem>>, %arg18: memref<1x64xf32, #tpu.memory_space<vmem>>, %arg19: memref<1x64xf32, #tpu.memory_space<vmem>>, %arg20: memref<1x1xf32, #tpu.memory_space<vmem>>, %arg21: memref<16x64xf32, #tpu.memory_space<vmem>>, %arg22: memref<1x16x32xf32, #tpu.memory_space<vmem>>, %arg23: memref<2x128xf32, #tpu.memory_space<vmem>>) attributes {dimension_semantics = [#tpu.dimension_semantics<arbitrary>], iteration_bounds = array<i64: 2>, scalar_prefetch = 0 : i64, scratch_operands = 0 : i64, tpu.core_type = #tpu.core_type<tc>, window_params = [{pipeline_mode = #tpu.pipeline_mode<synchronous>, transform_indices = @transform_0, window_bounds = array<i64: 16, 64>}, {pipeline_mode = #tpu.pipeline_mode<synchronous>, transform_indices = @transform_1, window_bounds = array<i64: 1, 64>}, {pipeline_mode = #tpu.pipeline_mode<synchronous>, transform_indices = @transform_2, window_bounds = array<i64: 1, 64>}, {pipeline_mode = #tpu.pipeline_mode<synchronous>, transform_indices = @transform_3, window_bounds = array<i64: 2, 8>}, {transform_indices = @transform_4, window_bounds = array<i64: 1, 64, 192>}, {transform_indices = @transform_5, window_bounds = array<i64: 1, 1, 192>}, {transform_indices = @transform_6, window_bounds = array<i64: 1, 64, 64>}, {transform_indices = @transform_7, window_bounds = array<i64: 1, 1, 64>}, {transform_indices = @transform_8, window_bounds = array<i64: 1, 1, 64>}, {transform_indices = @transform_9, window_bounds = array<i64: 1, 1, 64>}, {transform_indices = @transform_10, window_bounds = array<i64: 1, 64, 256>}, {transform_indices = @transform_11, window_bounds = array<i64: 1, 1, 256>}, {transform_indices = @transform_12, window_bounds = array<i64: 1, 256, 64>}, {transform_indices = @transform_13, window_bounds = array<i64: 1, 1, 64>}, {transform_indices = @transform_14, window_bounds = array<i64: 1, 1, 64>}, {transform_indices = @transform_15, window_bounds = array<i64: 1, 1, 64>}, {pipeline_mode = #tpu.pipeline_mode<synchronous>, transform_indices = @transform_16, window_bounds = array<i64: 64, 64>}, {pipeline_mode = #tpu.pipeline_mode<synchronous>, transform_indices = @transform_17, window_bounds = array<i64: 1, 64>}, {pipeline_mode = #tpu.pipeline_mode<synchronous>, transform_indices = @transform_18, window_bounds = array<i64: 1, 64>}, {pipeline_mode = #tpu.pipeline_mode<synchronous>, transform_indices = @transform_19, window_bounds = array<i64: 1, 1>}, {pipeline_mode = #tpu.pipeline_mode<synchronous>, transform_indices = @transform_20, window_bounds = array<i64: 16, 64>}, {transform_indices = @transform_21, window_bounds = array<i64: 1, 16, 32>}, {pipeline_mode = #tpu.pipeline_mode<synchronous>, transform_indices = @transform_22, window_bounds = array<i64: 2, 128>}]} {
    %c0_i32 = arith.constant 0 : i32
    %0 = arith.cmpi eq, %arg0, %c0_i32 : i32
    %1 = arith.extui %0 : i1 to i32
    %c0_i32_0 = arith.constant 0 : i32
    %2 = arith.cmpi ne, %1, %c0_i32_0 : i32
    scf.if %2 {
      %c0_103 = arith.constant 0 : index
      %c0_104 = arith.constant 0 : index
      %301 = vector.load %arg1[%c0_103, %c0_104] : memref<16x64xf32, #tpu.memory_space<vmem>>, vector<16x64xf32>
      %c0_105 = arith.constant 0 : index
      %c0_106 = arith.constant 0 : index
      %302 = vector.load %arg2[%c0_105, %c0_106] : memref<1x64xf32, #tpu.memory_space<vmem>>, vector<1x64xf32>
      %c0_107 = arith.constant 0 : index
      %c0_108 = arith.constant 0 : index
      %303 = vector.load %arg3[%c0_107, %c0_108] : memref<1x64xf32, #tpu.memory_space<vmem>>, vector<1x64xf32>
      %cst_109 = arith.constant dense<0.000000e+00> : vector<16xf32>
      %304 = vector.multi_reduction <add>, %301, %cst_109 [1] : vector<16x64xf32> to vector<16xf32>
      %305 = vector.shape_cast %304 : vector<16xf32> to vector<16x1xf32>
      %cst_110 = arith.constant 6.400000e+01 : f32
      %306 = vector.broadcast %cst_110 : f32 to vector<16x1xf32>
      %307 = arith.divf %305, %306 : vector<16x1xf32>
      %308 = vector.broadcast %307 : vector<16x1xf32> to vector<16x64xf32>
      %309 = arith.subf %301, %308 : vector<16x64xf32>
      %310 = arith.mulf %309, %309 : vector<16x64xf32>
      %cst_111 = arith.constant dense<0.000000e+00> : vector<16xf32>
      %311 = vector.multi_reduction <add>, %310, %cst_111 [1] : vector<16x64xf32> to vector<16xf32>
      %312 = vector.shape_cast %311 : vector<16xf32> to vector<16x1xf32>
      %cst_112 = arith.constant 6.400000e+01 : f32
      %313 = vector.broadcast %cst_112 : f32 to vector<16x1xf32>
      %314 = arith.divf %312, %313 : vector<16x1xf32>
      %cst_113 = arith.constant 9.99999996E-13 : f32
      %315 = vector.broadcast %cst_113 : f32 to vector<16x1xf32>
      %316 = arith.addf %314, %315 : vector<16x1xf32>
      %317 = math.rsqrt %316 : vector<16x1xf32>
      %318 = vector.broadcast %317 : vector<16x1xf32> to vector<16x64xf32>
      %319 = arith.mulf %309, %318 : vector<16x64xf32>
      %320 = vector.broadcast %302 : vector<1x64xf32> to vector<16x64xf32>
      %321 = arith.mulf %319, %320 : vector<16x64xf32>
      %322 = vector.broadcast %303 : vector<1x64xf32> to vector<16x64xf32>
      %323 = arith.addf %321, %322 : vector<16x64xf32>
      %c0_114 = arith.constant 0 : index
      %c0_115 = arith.constant 0 : index
      %324 = vector.load %arg21[%c0_114, %c0_115] : memref<16x64xf32, #tpu.memory_space<vmem>>, vector<16x64xf32>
      tpu.vector_store %arg21[%c0_114, %c0_115], %323 {strides = array<i32>} : memref<16x64xf32, #tpu.memory_space<vmem>>, vector<16x64xf32>,
    } else {
    }
    %c0 = arith.constant 0 : index
    %c0_1 = arith.constant 0 : index
    %3 = vector.load %arg21[%c0, %c0_1] : memref<16x64xf32, #tpu.memory_space<vmem>>, vector<16x64xf32>
    %4 = arith.truncf %3 : vector<16x64xf32> to vector<16x64xbf16>
    %c0_2 = arith.constant 0 : index
    %c0_3 = arith.constant 0 : index
    %c0_4 = arith.constant 0 : index
    %5 = vector.load %arg5[%c0_2, %c0_3, %c0_4] : memref<1x64x192xbf16, #tpu.memory_space<vmem>>, vector<1x64x192xbf16>
    %6 = vector.shape_cast %5 : vector<1x64x192xbf16> to vector<64x192xbf16>
    %cst = arith.constant dense<0.000000e+00> : vector<16x192xf32>
    %7 = tpu.matmul %4, %6, %cst {dimension_numbers = #tpu.dot_dimension_numbers<[1], [0], [0], [1], [0, 0, 1, 1], [], []>} : vector<16x64xbf16>, vector<64x192xbf16>, vector<16x192xf32> -> vector<16x192xf32>
    %c0_5 = arith.constant 0 : index
    %c0_6 = arith.constant 0 : index
    %c0_7 = arith.constant 0 : index
    %8 = vector.load %arg6[%c0_5, %c0_6, %c0_7] : memref<1x1x192xf32, #tpu.memory_space<vmem>>, vector<1x1x192xf32>
    %9 = vector.shape_cast %8 : vector<1x1x192xf32> to vector<1x192xf32>
    %10 = vector.broadcast %9 : vector<1x192xf32> to vector<16x192xf32>
    %11 = arith.addf %7, %10 : vector<16x192xf32>
    %c0_8 = arith.constant 0 : index
    %c0_9 = arith.constant 0 : index
    %12 = vector.load %arg4[%c0_8, %c0_9] : memref<2x8xf32, #tpu.memory_space<vmem>>, vector<2x8xf32>
    %13 = vector.extract_strided_slice %11 {offsets = [0, 0], sizes = [8, 192], strides = [1, 1]} : vector<16x192xf32> to vector<8x192xf32>
    %14 = vector.extract_strided_slice %12 {offsets = [0, 0], sizes = [1, 8], strides = [1, 1]} : vector<2x8xf32> to vector<1x8xf32>
    %15 = vector.extract_strided_slice %13 {offsets = [0, 0], sizes = [8, 16], strides = [1, 1]} : vector<8x192xf32> to vector<8x16xf32>
    %16 = vector.extract_strided_slice %13 {offsets = [0, 64], sizes = [8, 16], strides = [1, 1]} : vector<8x192xf32> to vector<8x16xf32>
    %17 = vector.extract_strided_slice %13 {offsets = [0, 128], sizes = [8, 16], strides = [1, 1]} : vector<8x192xf32> to vector<8x16xf32>
    %18 = arith.truncf %15 : vector<8x16xf32> to vector<8x16xbf16>
    %19 = arith.truncf %16 : vector<8x16xf32> to vector<8x16xbf16>
    %cst_10 = arith.constant dense<0.000000e+00> : vector<8x8xf32>
    %20 = tpu.matmul %18, %19, %cst_10 {dimension_numbers = #tpu.dot_dimension_numbers<[1], [1], [0], [0], [0, 0, 1, 0], [], []>} : vector<8x16xbf16>, vector<8x16xbf16>, vector<8x8xf32> -> vector<8x8xf32>
    %cst_11 = arith.constant 2.500000e-01 : f32
    %21 = vector.broadcast %cst_11 : f32 to vector<8x8xf32>
    %22 = arith.mulf %20, %21 : vector<8x8xf32>
    %23 = vector.broadcast %14 : vector<1x8xf32> to vector<8x8xf32>
    %24 = arith.addf %22, %23 : vector<8x8xf32>
    %cst_12 = arith.constant dense<0xFF800000> : vector<8xf32>
    %25 = vector.multi_reduction <maximumf>, %24, %cst_12 [1] : vector<8x8xf32> to vector<8xf32>
    %26 = vector.shape_cast %25 : vector<8xf32> to vector<8x1xf32>
    %27 = vector.broadcast %26 : vector<8x1xf32> to vector<8x8xf32>
    %28 = arith.subf %24, %27 : vector<8x8xf32>
    %29 = math.exp %28 : vector<8x8xf32>
    %cst_13 = arith.constant dense<0.000000e+00> : vector<8xf32>
    %30 = vector.multi_reduction <add>, %29, %cst_13 [1] : vector<8x8xf32> to vector<8xf32>
    %31 = vector.shape_cast %30 : vector<8xf32> to vector<8x1xf32>
    %32 = tpu.reciprocal %31 {approx = true} : vector<8x1xf32> -> vector<8x1xf32>
    %33 = vector.broadcast %32 : vector<8x1xf32> to vector<8x8xf32>
    %34 = arith.mulf %29, %33 : vector<8x8xf32>
    %35 = arith.truncf %34 : vector<8x8xf32> to vector<8x8xbf16>
    %36 = arith.truncf %17 : vector<8x16xf32> to vector<8x16xbf16>
    %cst_14 = arith.constant dense<0.000000e+00> : vector<8x16xf32>
    %37 = tpu.matmul %35, %36, %cst_14 {dimension_numbers = #tpu.dot_dimension_numbers<[1], [0], [0], [1], [0, 0, 1, 1], [], []>} : vector<8x8xbf16>, vector<8x16xbf16>, vector<8x16xf32> -> vector<8x16xf32>
    %38 = vector.extract_strided_slice %13 {offsets = [0, 16], sizes = [8, 16], strides = [1, 1]} : vector<8x192xf32> to vector<8x16xf32>
    %39 = vector.extract_strided_slice %13 {offsets = [0, 80], sizes = [8, 16], strides = [1, 1]} : vector<8x192xf32> to vector<8x16xf32>
    %40 = vector.extract_strided_slice %13 {offsets = [0, 144], sizes = [8, 16], strides = [1, 1]} : vector<8x192xf32> to vector<8x16xf32>
    %41 = arith.truncf %38 : vector<8x16xf32> to vector<8x16xbf16>
    %42 = arith.truncf %39 : vector<8x16xf32> to vector<8x16xbf16>
    %cst_15 = arith.constant dense<0.000000e+00> : vector<8x8xf32>
    %43 = tpu.matmul %41, %42, %cst_15 {dimension_numbers = #tpu.dot_dimension_numbers<[1], [1], [0], [0], [0, 0, 1, 0], [], []>} : vector<8x16xbf16>, vector<8x16xbf16>, vector<8x8xf32> -> vector<8x8xf32>
    %cst_16 = arith.constant 2.500000e-01 : f32
    %44 = vector.broadcast %cst_16 : f32 to vector<8x8xf32>
    %45 = arith.mulf %43, %44 : vector<8x8xf32>
    %46 = vector.broadcast %14 : vector<1x8xf32> to vector<8x8xf32>
    %47 = arith.addf %45, %46 : vector<8x8xf32>
    %cst_17 = arith.constant dense<0xFF800000> : vector<8xf32>
    %48 = vector.multi_reduction <maximumf>, %47, %cst_17 [1] : vector<8x8xf32> to vector<8xf32>
    %49 = vector.shape_cast %48 : vector<8xf32> to vector<8x1xf32>
    %50 = vector.broadcast %49 : vector<8x1xf32> to vector<8x8xf32>
    %51 = arith.subf %47, %50 : vector<8x8xf32>
    %52 = math.exp %51 : vector<8x8xf32>
    %cst_18 = arith.constant dense<0.000000e+00> : vector<8xf32>
    %53 = vector.multi_reduction <add>, %52, %cst_18 [1] : vector<8x8xf32> to vector<8xf32>
    %54 = vector.shape_cast %53 : vector<8xf32> to vector<8x1xf32>
    %55 = tpu.reciprocal %54 {approx = true} : vector<8x1xf32> -> vector<8x1xf32>
    %56 = vector.broadcast %55 : vector<8x1xf32> to vector<8x8xf32>
    %57 = arith.mulf %52, %56 : vector<8x8xf32>
    %58 = arith.truncf %57 : vector<8x8xf32> to vector<8x8xbf16>
    %59 = arith.truncf %40 : vector<8x16xf32> to vector<8x16xbf16>
    %cst_19 = arith.constant dense<0.000000e+00> : vector<8x16xf32>
    %60 = tpu.matmul %58, %59, %cst_19 {dimension_numbers = #tpu.dot_dimension_numbers<[1], [0], [0], [1], [0, 0, 1, 1], [], []>} : vector<8x8xbf16>, vector<8x16xbf16>, vector<8x16xf32> -> vector<8x16xf32>
    %61 = vector.extract_strided_slice %13 {offsets = [0, 32], sizes = [8, 16], strides = [1, 1]} : vector<8x192xf32> to vector<8x16xf32>
    %62 = vector.extract_strided_slice %13 {offsets = [0, 96], sizes = [8, 16], strides = [1, 1]} : vector<8x192xf32> to vector<8x16xf32>
    %63 = vector.extract_strided_slice %13 {offsets = [0, 160], sizes = [8, 16], strides = [1, 1]} : vector<8x192xf32> to vector<8x16xf32>
    %64 = arith.truncf %61 : vector<8x16xf32> to vector<8x16xbf16>
    %65 = arith.truncf %62 : vector<8x16xf32> to vector<8x16xbf16>
    %cst_20 = arith.constant dense<0.000000e+00> : vector<8x8xf32>
    %66 = tpu.matmul %64, %65, %cst_20 {dimension_numbers = #tpu.dot_dimension_numbers<[1], [1], [0], [0], [0, 0, 1, 0], [], []>} : vector<8x16xbf16>, vector<8x16xbf16>, vector<8x8xf32> -> vector<8x8xf32>
    %cst_21 = arith.constant 2.500000e-01 : f32
    %67 = vector.broadcast %cst_21 : f32 to vector<8x8xf32>
    %68 = arith.mulf %66, %67 : vector<8x8xf32>
    %69 = vector.broadcast %14 : vector<1x8xf32> to vector<8x8xf32>
    %70 = arith.addf %68, %69 : vector<8x8xf32>
    %cst_22 = arith.constant dense<0xFF800000> : vector<8xf32>
    %71 = vector.multi_reduction <maximumf>, %70, %cst_22 [1] : vector<8x8xf32> to vector<8xf32>
    %72 = vector.shape_cast %71 : vector<8xf32> to vector<8x1xf32>
    %73 = vector.broadcast %72 : vector<8x1xf32> to vector<8x8xf32>
    %74 = arith.subf %70, %73 : vector<8x8xf32>
    %75 = math.exp %74 : vector<8x8xf32>
    %cst_23 = arith.constant dense<0.000000e+00> : vector<8xf32>
    %76 = vector.multi_reduction <add>, %75, %cst_23 [1] : vector<8x8xf32> to vector<8xf32>
    %77 = vector.shape_cast %76 : vector<8xf32> to vector<8x1xf32>
    %78 = tpu.reciprocal %77 {approx = true} : vector<8x1xf32> -> vector<8x1xf32>
    %79 = vector.broadcast %78 : vector<8x1xf32> to vector<8x8xf32>
    %80 = arith.mulf %75, %79 : vector<8x8xf32>
    %81 = arith.truncf %80 : vector<8x8xf32> to vector<8x8xbf16>
    %82 = arith.truncf %63 : vector<8x16xf32> to vector<8x16xbf16>
    %cst_24 = arith.constant dense<0.000000e+00> : vector<8x16xf32>
    %83 = tpu.matmul %81, %82, %cst_24 {dimension_numbers = #tpu.dot_dimension_numbers<[1], [0], [0], [1], [0, 0, 1, 1], [], []>} : vector<8x8xbf16>, vector<8x16xbf16>, vector<8x16xf32> -> vector<8x16xf32>
    %84 = vector.extract_strided_slice %13 {offsets = [0, 48], sizes = [8, 16], strides = [1, 1]} : vector<8x192xf32> to vector<8x16xf32>
    %85 = vector.extract_strided_slice %13 {offsets = [0, 112], sizes = [8, 16], strides = [1, 1]} : vector<8x192xf32> to vector<8x16xf32>
    %86 = vector.extract_strided_slice %13 {offsets = [0, 176], sizes = [8, 16], strides = [1, 1]} : vector<8x192xf32> to vector<8x16xf32>
    %87 = arith.truncf %84 : vector<8x16xf32> to vector<8x16xbf16>
    %88 = arith.truncf %85 : vector<8x16xf32> to vector<8x16xbf16>
    %cst_25 = arith.constant dense<0.000000e+00> : vector<8x8xf32>
    %89 = tpu.matmul %87, %88, %cst_25 {dimension_numbers = #tpu.dot_dimension_numbers<[1], [1], [0], [0], [0, 0, 1, 0], [], []>} : vector<8x16xbf16>, vector<8x16xbf16>, vector<8x8xf32> -> vector<8x8xf32>
    %cst_26 = arith.constant 2.500000e-01 : f32
    %90 = vector.broadcast %cst_26 : f32 to vector<8x8xf32>
    %91 = arith.mulf %89, %90 : vector<8x8xf32>
    %92 = vector.broadcast %14 : vector<1x8xf32> to vector<8x8xf32>
    %93 = arith.addf %91, %92 : vector<8x8xf32>
    %cst_27 = arith.constant dense<0xFF800000> : vector<8xf32>
    %94 = vector.multi_reduction <maximumf>, %93, %cst_27 [1] : vector<8x8xf32> to vector<8xf32>
    %95 = vector.shape_cast %94 : vector<8xf32> to vector<8x1xf32>
    %96 = vector.broadcast %95 : vector<8x1xf32> to vector<8x8xf32>
    %97 = arith.subf %93, %96 : vector<8x8xf32>
    %98 = math.exp %97 : vector<8x8xf32>
    %cst_28 = arith.constant dense<0.000000e+00> : vector<8xf32>
    %99 = vector.multi_reduction <add>, %98, %cst_28 [1] : vector<8x8xf32> to vector<8xf32>
    %100 = vector.shape_cast %99 : vector<8xf32> to vector<8x1xf32>
    %101 = tpu.reciprocal %100 {approx = true} : vector<8x1xf32> -> vector<8x1xf32>
    %102 = vector.broadcast %101 : vector<8x1xf32> to vector<8x8xf32>
    %103 = arith.mulf %98, %102 : vector<8x8xf32>
    %104 = arith.truncf %103 : vector<8x8xf32> to vector<8x8xbf16>
    %105 = arith.truncf %86 : vector<8x16xf32> to vector<8x16xbf16>
    %cst_29 = arith.constant dense<0.000000e+00> : vector<8x16xf32>
    %106 = tpu.matmul %104, %105, %cst_29 {dimension_numbers = #tpu.dot_dimension_numbers<[1], [0], [0], [1], [0, 0, 1, 1], [], []>} : vector<8x8xbf16>, vector<8x16xbf16>, vector<8x16xf32> -> vector<8x16xf32>
    %107 = tpu.concatenate %37, %60, %83, %106 in 1 : vector<8x16xf32>, vector<8x16xf32>, vector<8x16xf32>, vector<8x16xf32> -> vector<8x64xf32>
    %108 = tpu.concatenate %34, %57, %80, %103 in 1 : vector<8x8xf32>, vector<8x8xf32>, vector<8x8xf32>, vector<8x8xf32> -> vector<8x32xf32>
    %109 = vector.extract_strided_slice %11 {offsets = [8, 0], sizes = [8, 192], strides = [1, 1]} : vector<16x192xf32> to vector<8x192xf32>
    %110 = vector.extract_strided_slice %12 {offsets = [1, 0], sizes = [1, 8], strides = [1, 1]} : vector<2x8xf32> to vector<1x8xf32>
    %111 = vector.extract_strided_slice %109 {offsets = [0, 0], sizes = [8, 16], strides = [1, 1]} : vector<8x192xf32> to vector<8x16xf32>
    %112 = vector.extract_strided_slice %109 {offsets = [0, 64], sizes = [8, 16], strides = [1, 1]} : vector<8x192xf32> to vector<8x16xf32>
    %113 = vector.extract_strided_slice %109 {offsets = [0, 128], sizes = [8, 16], strides = [1, 1]} : vector<8x192xf32> to vector<8x16xf32>
    %114 = arith.truncf %111 : vector<8x16xf32> to vector<8x16xbf16>
    %115 = arith.truncf %112 : vector<8x16xf32> to vector<8x16xbf16>
    %cst_30 = arith.constant dense<0.000000e+00> : vector<8x8xf32>
    %116 = tpu.matmul %114, %115, %cst_30 {dimension_numbers = #tpu.dot_dimension_numbers<[1], [1], [0], [0], [0, 0, 1, 0], [], []>} : vector<8x16xbf16>, vector<8x16xbf16>, vector<8x8xf32> -> vector<8x8xf32>
    %cst_31 = arith.constant 2.500000e-01 : f32
    %117 = vector.broadcast %cst_31 : f32 to vector<8x8xf32>
    %118 = arith.mulf %116, %117 : vector<8x8xf32>
    %119 = vector.broadcast %110 : vector<1x8xf32> to vector<8x8xf32>
    %120 = arith.addf %118, %119 : vector<8x8xf32>
    %cst_32 = arith.constant dense<0xFF800000> : vector<8xf32>
    %121 = vector.multi_reduction <maximumf>, %120, %cst_32 [1] : vector<8x8xf32> to vector<8xf32>
    %122 = vector.shape_cast %121 : vector<8xf32> to vector<8x1xf32>
    %123 = vector.broadcast %122 : vector<8x1xf32> to vector<8x8xf32>
    %124 = arith.subf %120, %123 : vector<8x8xf32>
    %125 = math.exp %124 : vector<8x8xf32>
    %cst_33 = arith.constant dense<0.000000e+00> : vector<8xf32>
    %126 = vector.multi_reduction <add>, %125, %cst_33 [1] : vector<8x8xf32> to vector<8xf32>
    %127 = vector.shape_cast %126 : vector<8xf32> to vector<8x1xf32>
    %128 = tpu.reciprocal %127 {approx = true} : vector<8x1xf32> -> vector<8x1xf32>
    %129 = vector.broadcast %128 : vector<8x1xf32> to vector<8x8xf32>
    %130 = arith.mulf %125, %129 : vector<8x8xf32>
    %131 = arith.truncf %130 : vector<8x8xf32> to vector<8x8xbf16>
    %132 = arith.truncf %113 : vector<8x16xf32> to vector<8x16xbf16>
    %cst_34 = arith.constant dense<0.000000e+00> : vector<8x16xf32>
    %133 = tpu.matmul %131, %132, %cst_34 {dimension_numbers = #tpu.dot_dimension_numbers<[1], [0], [0], [1], [0, 0, 1, 1], [], []>} : vector<8x8xbf16>, vector<8x16xbf16>, vector<8x16xf32> -> vector<8x16xf32>
    %134 = vector.extract_strided_slice %109 {offsets = [0, 16], sizes = [8, 16], strides = [1, 1]} : vector<8x192xf32> to vector<8x16xf32>
    %135 = vector.extract_strided_slice %109 {offsets = [0, 80], sizes = [8, 16], strides = [1, 1]} : vector<8x192xf32> to vector<8x16xf32>
    %136 = vector.extract_strided_slice %109 {offsets = [0, 144], sizes = [8, 16], strides = [1, 1]} : vector<8x192xf32> to vector<8x16xf32>
    %137 = arith.truncf %134 : vector<8x16xf32> to vector<8x16xbf16>
    %138 = arith.truncf %135 : vector<8x16xf32> to vector<8x16xbf16>
    %cst_35 = arith.constant dense<0.000000e+00> : vector<8x8xf32>
    %139 = tpu.matmul %137, %138, %cst_35 {dimension_numbers = #tpu.dot_dimension_numbers<[1], [1], [0], [0], [0, 0, 1, 0], [], []>} : vector<8x16xbf16>, vector<8x16xbf16>, vector<8x8xf32> -> vector<8x8xf32>
    %cst_36 = arith.constant 2.500000e-01 : f32
    %140 = vector.broadcast %cst_36 : f32 to vector<8x8xf32>
    %141 = arith.mulf %139, %140 : vector<8x8xf32>
    %142 = vector.broadcast %110 : vector<1x8xf32> to vector<8x8xf32>
    %143 = arith.addf %141, %142 : vector<8x8xf32>
    %cst_37 = arith.constant dense<0xFF800000> : vector<8xf32>
    %144 = vector.multi_reduction <maximumf>, %143, %cst_37 [1] : vector<8x8xf32> to vector<8xf32>
    %145 = vector.shape_cast %144 : vector<8xf32> to vector<8x1xf32>
    %146 = vector.broadcast %145 : vector<8x1xf32> to vector<8x8xf32>
    %147 = arith.subf %143, %146 : vector<8x8xf32>
    %148 = math.exp %147 : vector<8x8xf32>
    %cst_38 = arith.constant dense<0.000000e+00> : vector<8xf32>
    %149 = vector.multi_reduction <add>, %148, %cst_38 [1] : vector<8x8xf32> to vector<8xf32>
    %150 = vector.shape_cast %149 : vector<8xf32> to vector<8x1xf32>
    %151 = tpu.reciprocal %150 {approx = true} : vector<8x1xf32> -> vector<8x1xf32>
    %152 = vector.broadcast %151 : vector<8x1xf32> to vector<8x8xf32>
    %153 = arith.mulf %148, %152 : vector<8x8xf32>
    %154 = arith.truncf %153 : vector<8x8xf32> to vector<8x8xbf16>
    %155 = arith.truncf %136 : vector<8x16xf32> to vector<8x16xbf16>
    %cst_39 = arith.constant dense<0.000000e+00> : vector<8x16xf32>
    %156 = tpu.matmul %154, %155, %cst_39 {dimension_numbers = #tpu.dot_dimension_numbers<[1], [0], [0], [1], [0, 0, 1, 1], [], []>} : vector<8x8xbf16>, vector<8x16xbf16>, vector<8x16xf32> -> vector<8x16xf32>
    %157 = vector.extract_strided_slice %109 {offsets = [0, 32], sizes = [8, 16], strides = [1, 1]} : vector<8x192xf32> to vector<8x16xf32>
    %158 = vector.extract_strided_slice %109 {offsets = [0, 96], sizes = [8, 16], strides = [1, 1]} : vector<8x192xf32> to vector<8x16xf32>
    %159 = vector.extract_strided_slice %109 {offsets = [0, 160], sizes = [8, 16], strides = [1, 1]} : vector<8x192xf32> to vector<8x16xf32>
    %160 = arith.truncf %157 : vector<8x16xf32> to vector<8x16xbf16>
    %161 = arith.truncf %158 : vector<8x16xf32> to vector<8x16xbf16>
    %cst_40 = arith.constant dense<0.000000e+00> : vector<8x8xf32>
    %162 = tpu.matmul %160, %161, %cst_40 {dimension_numbers = #tpu.dot_dimension_numbers<[1], [1], [0], [0], [0, 0, 1, 0], [], []>} : vector<8x16xbf16>, vector<8x16xbf16>, vector<8x8xf32> -> vector<8x8xf32>
    %cst_41 = arith.constant 2.500000e-01 : f32
    %163 = vector.broadcast %cst_41 : f32 to vector<8x8xf32>
    %164 = arith.mulf %162, %163 : vector<8x8xf32>
    %165 = vector.broadcast %110 : vector<1x8xf32> to vector<8x8xf32>
    %166 = arith.addf %164, %165 : vector<8x8xf32>
    %cst_42 = arith.constant dense<0xFF800000> : vector<8xf32>
    %167 = vector.multi_reduction <maximumf>, %166, %cst_42 [1] : vector<8x8xf32> to vector<8xf32>
    %168 = vector.shape_cast %167 : vector<8xf32> to vector<8x1xf32>
    %169 = vector.broadcast %168 : vector<8x1xf32> to vector<8x8xf32>
    %170 = arith.subf %166, %169 : vector<8x8xf32>
    %171 = math.exp %170 : vector<8x8xf32>
    %cst_43 = arith.constant dense<0.000000e+00> : vector<8xf32>
    %172 = vector.multi_reduction <add>, %171, %cst_43 [1] : vector<8x8xf32> to vector<8xf32>
    %173 = vector.shape_cast %172 : vector<8xf32> to vector<8x1xf32>
    %174 = tpu.reciprocal %173 {approx = true} : vector<8x1xf32> -> vector<8x1xf32>
    %175 = vector.broadcast %174 : vector<8x1xf32> to vector<8x8xf32>
    %176 = arith.mulf %171, %175 : vector<8x8xf32>
    %177 = arith.truncf %176 : vector<8x8xf32> to vector<8x8xbf16>
    %178 = arith.truncf %159 : vector<8x16xf32> to vector<8x16xbf16>
    %cst_44 = arith.constant dense<0.000000e+00> : vector<8x16xf32>
    %179 = tpu.matmul %177, %178, %cst_44 {dimension_numbers = #tpu.dot_dimension_numbers<[1], [0], [0], [1], [0, 0, 1, 1], [], []>} : vector<8x8xbf16>, vector<8x16xbf16>, vector<8x16xf32> -> vector<8x16xf32>
    %180 = vector.extract_strided_slice %109 {offsets = [0, 48], sizes = [8, 16], strides = [1, 1]} : vector<8x192xf32> to vector<8x16xf32>
    %181 = vector.extract_strided_slice %109 {offsets = [0, 112], sizes = [8, 16], strides = [1, 1]} : vector<8x192xf32> to vector<8x16xf32>
    %182 = vector.extract_strided_slice %109 {offsets = [0, 176], sizes = [8, 16], strides = [1, 1]} : vector<8x192xf32> to vector<8x16xf32>
    %183 = arith.truncf %180 : vector<8x16xf32> to vector<8x16xbf16>
    %184 = arith.truncf %181 : vector<8x16xf32> to vector<8x16xbf16>
    %cst_45 = arith.constant dense<0.000000e+00> : vector<8x8xf32>
    %185 = tpu.matmul %183, %184, %cst_45 {dimension_numbers = #tpu.dot_dimension_numbers<[1], [1], [0], [0], [0, 0, 1, 0], [], []>} : vector<8x16xbf16>, vector<8x16xbf16>, vector<8x8xf32> -> vector<8x8xf32>
    %cst_46 = arith.constant 2.500000e-01 : f32
    %186 = vector.broadcast %cst_46 : f32 to vector<8x8xf32>
    %187 = arith.mulf %185, %186 : vector<8x8xf32>
    %188 = vector.broadcast %110 : vector<1x8xf32> to vector<8x8xf32>
    %189 = arith.addf %187, %188 : vector<8x8xf32>
    %cst_47 = arith.constant dense<0xFF800000> : vector<8xf32>
    %190 = vector.multi_reduction <maximumf>, %189, %cst_47 [1] : vector<8x8xf32> to vector<8xf32>
    %191 = vector.shape_cast %190 : vector<8xf32> to vector<8x1xf32>
    %192 = vector.broadcast %191 : vector<8x1xf32> to vector<8x8xf32>
    %193 = arith.subf %189, %192 : vector<8x8xf32>
    %194 = math.exp %193 : vector<8x8xf32>
    %cst_48 = arith.constant dense<0.000000e+00> : vector<8xf32>
    %195 = vector.multi_reduction <add>, %194, %cst_48 [1] : vector<8x8xf32> to vector<8xf32>
    %196 = vector.shape_cast %195 : vector<8xf32> to vector<8x1xf32>
    %197 = tpu.reciprocal %196 {approx = true} : vector<8x1xf32> -> vector<8x1xf32>
    %198 = vector.broadcast %197 : vector<8x1xf32> to vector<8x8xf32>
    %199 = arith.mulf %194, %198 : vector<8x8xf32>
    %200 = arith.truncf %199 : vector<8x8xf32> to vector<8x8xbf16>
    %201 = arith.truncf %182 : vector<8x16xf32> to vector<8x16xbf16>
    %cst_49 = arith.constant dense<0.000000e+00> : vector<8x16xf32>
    %202 = tpu.matmul %200, %201, %cst_49 {dimension_numbers = #tpu.dot_dimension_numbers<[1], [0], [0], [1], [0, 0, 1, 1], [], []>} : vector<8x8xbf16>, vector<8x16xbf16>, vector<8x16xf32> -> vector<8x16xf32>
    %203 = tpu.concatenate %133, %156, %179, %202 in 1 : vector<8x16xf32>, vector<8x16xf32>, vector<8x16xf32>, vector<8x16xf32> -> vector<8x64xf32>
    %204 = tpu.concatenate %130, %153, %176, %199 in 1 : vector<8x8xf32>, vector<8x8xf32>, vector<8x8xf32>, vector<8x8xf32> -> vector<8x32xf32>
    %205 = tpu.concatenate %108, %204 in 0 : vector<8x32xf32>, vector<8x32xf32> -> vector<16x32xf32>
    %c0_50 = arith.constant 0 : index
    %c0_51 = arith.constant 0 : index
    %c0_52 = arith.constant 0 : index
    %206 = vector.load %arg22[%c0_50, %c0_51, %c0_52] : memref<1x16x32xf32, #tpu.memory_space<vmem>>, vector<1x16x32xf32>
    %207 = vector.shape_cast %206 : vector<1x16x32xf32> to vector<16x32xf32>
    %208 = vector.shape_cast %205 : vector<16x32xf32> to vector<1x16x32xf32>
    tpu.vector_store %arg22[%c0_50, %c0_51, %c0_52], %208 {strides = array<i32>} : memref<1x16x32xf32, #tpu.memory_space<vmem>>, vector<1x16x32xf32>,
    %209 = tpu.concatenate %107, %203 in 0 : vector<8x64xf32>, vector<8x64xf32> -> vector<16x64xf32>
    %210 = arith.truncf %209 : vector<16x64xf32> to vector<16x64xbf16>
    %c0_53 = arith.constant 0 : index
    %c0_54 = arith.constant 0 : index
    %c0_55 = arith.constant 0 : index
    %211 = vector.load %arg7[%c0_53, %c0_54, %c0_55] : memref<1x64x64xbf16, #tpu.memory_space<vmem>>, vector<1x64x64xbf16>
    %212 = vector.shape_cast %211 : vector<1x64x64xbf16> to vector<64x64xbf16>
    %cst_56 = arith.constant dense<0.000000e+00> : vector<16x64xf32>
    %213 = tpu.matmul %210, %212, %cst_56 {dimension_numbers = #tpu.dot_dimension_numbers<[1], [0], [0], [1], [0, 0, 1, 1], [], []>} : vector<16x64xbf16>, vector<64x64xbf16>, vector<16x64xf32> -> vector<16x64xf32>
    %c0_57 = arith.constant 0 : index
    %c0_58 = arith.constant 0 : index
    %c0_59 = arith.constant 0 : index
    %214 = vector.load %arg8[%c0_57, %c0_58, %c0_59] : memref<1x1x64xf32, #tpu.memory_space<vmem>>, vector<1x1x64xf32>
    %215 = vector.shape_cast %214 : vector<1x1x64xf32> to vector<1x64xf32>
    %216 = vector.broadcast %215 : vector<1x64xf32> to vector<16x64xf32>
    %217 = arith.addf %213, %216 : vector<16x64xf32>
    %218 = arith.addf %217, %3 : vector<16x64xf32>
    %c0_60 = arith.constant 0 : index
    %c0_61 = arith.constant 0 : index
    %c0_62 = arith.constant 0 : index
    %219 = vector.load %arg9[%c0_60, %c0_61, %c0_62] : memref<1x1x64xf32, #tpu.memory_space<vmem>>, vector<1x1x64xf32>
    %220 = vector.shape_cast %219 : vector<1x1x64xf32> to vector<1x64xf32>
    %c0_63 = arith.constant 0 : index
    %c0_64 = arith.constant 0 : index
    %c0_65 = arith.constant 0 : index
    %221 = vector.load %arg10[%c0_63, %c0_64, %c0_65] : memref<1x1x64xf32, #tpu.memory_space<vmem>>, vector<1x1x64xf32>
    %222 = vector.shape_cast %221 : vector<1x1x64xf32> to vector<1x64xf32>
    %cst_66 = arith.constant dense<0.000000e+00> : vector<16xf32>
    %223 = vector.multi_reduction <add>, %218, %cst_66 [1] : vector<16x64xf32> to vector<16xf32>
    %224 = vector.shape_cast %223 : vector<16xf32> to vector<16x1xf32>
    %cst_67 = arith.constant 6.400000e+01 : f32
    %225 = vector.broadcast %cst_67 : f32 to vector<16x1xf32>
    %226 = arith.divf %224, %225 : vector<16x1xf32>
    %227 = vector.broadcast %226 : vector<16x1xf32> to vector<16x64xf32>
    %228 = arith.subf %218, %227 : vector<16x64xf32>
    %229 = arith.mulf %228, %228 : vector<16x64xf32>
    %cst_68 = arith.constant dense<0.000000e+00> : vector<16xf32>
    %230 = vector.multi_reduction <add>, %229, %cst_68 [1] : vector<16x64xf32> to vector<16xf32>
    %231 = vector.shape_cast %230 : vector<16xf32> to vector<16x1xf32>
    %cst_69 = arith.constant 6.400000e+01 : f32
    %232 = vector.broadcast %cst_69 : f32 to vector<16x1xf32>
    %233 = arith.divf %231, %232 : vector<16x1xf32>
    %cst_70 = arith.constant 9.99999996E-13 : f32
    %234 = vector.broadcast %cst_70 : f32 to vector<16x1xf32>
    %235 = arith.addf %233, %234 : vector<16x1xf32>
    %236 = math.rsqrt %235 : vector<16x1xf32>
    %237 = vector.broadcast %236 : vector<16x1xf32> to vector<16x64xf32>
    %238 = arith.mulf %228, %237 : vector<16x64xf32>
    %239 = vector.broadcast %220 : vector<1x64xf32> to vector<16x64xf32>
    %240 = arith.mulf %238, %239 : vector<16x64xf32>
    %241 = vector.broadcast %222 : vector<1x64xf32> to vector<16x64xf32>
    %242 = arith.addf %240, %241 : vector<16x64xf32>
    %243 = arith.truncf %242 : vector<16x64xf32> to vector<16x64xbf16>
    %c0_71 = arith.constant 0 : index
    %c0_72 = arith.constant 0 : index
    %c0_73 = arith.constant 0 : index
    %244 = vector.load %arg11[%c0_71, %c0_72, %c0_73] : memref<1x64x256xbf16, #tpu.memory_space<vmem>>, vector<1x64x256xbf16>
    %245 = vector.shape_cast %244 : vector<1x64x256xbf16> to vector<64x256xbf16>
    %cst_74 = arith.constant dense<0.000000e+00> : vector<16x256xf32>
    %246 = tpu.matmul %243, %245, %cst_74 {dimension_numbers = #tpu.dot_dimension_numbers<[1], [0], [0], [1], [0, 0, 1, 1], [], []>} : vector<16x64xbf16>, vector<64x256xbf16>, vector<16x256xf32> -> vector<16x256xf32>
    %c0_75 = arith.constant 0 : index
    %c0_76 = arith.constant 0 : index
    %c0_77 = arith.constant 0 : index
    %247 = vector.load %arg12[%c0_75, %c0_76, %c0_77] : memref<1x1x256xf32, #tpu.memory_space<vmem>>, vector<1x1x256xf32>
    %248 = vector.shape_cast %247 : vector<1x1x256xf32> to vector<1x256xf32>
    %249 = vector.broadcast %248 : vector<1x256xf32> to vector<16x256xf32>
    %250 = arith.addf %246, %249 : vector<16x256xf32>
    %cst_78 = arith.constant 5.000000e-01 : f32
    %251 = vector.broadcast %cst_78 : f32 to vector<16x256xf32>
    %252 = arith.mulf %251, %250 : vector<16x256xf32>
    %cst_79 = arith.constant 4.471500e-02 : f32
    %253 = vector.broadcast %cst_79 : f32 to vector<16x256xf32>
    %254 = arith.mulf %253, %250 : vector<16x256xf32>
    %255 = arith.mulf %254, %250 : vector<16x256xf32>
    %256 = arith.mulf %255, %250 : vector<16x256xf32>
    %257 = arith.addf %250, %256 : vector<16x256xf32>
    %cst_80 = arith.constant 0.797884583 : f32
    %258 = vector.broadcast %cst_80 : f32 to vector<16x256xf32>
    %259 = arith.mulf %258, %257 : vector<16x256xf32>
    %260 = math.tanh %259 : vector<16x256xf32>
    %cst_81 = arith.constant 1.000000e+00 : f32
    %261 = vector.broadcast %cst_81 : f32 to vector<16x256xf32>
    %262 = arith.addf %261, %260 : vector<16x256xf32>
    %263 = arith.mulf %252, %262 : vector<16x256xf32>
    %264 = arith.truncf %263 : vector<16x256xf32> to vector<16x256xbf16>
    %c0_82 = arith.constant 0 : index
    %c0_83 = arith.constant 0 : index
    %c0_84 = arith.constant 0 : index
    %265 = vector.load %arg13[%c0_82, %c0_83, %c0_84] : memref<1x256x64xbf16, #tpu.memory_space<vmem>>, vector<1x256x64xbf16>
    %266 = vector.shape_cast %265 : vector<1x256x64xbf16> to vector<256x64xbf16>
    %cst_85 = arith.constant dense<0.000000e+00> : vector<16x64xf32>
    %267 = tpu.matmul %264, %266, %cst_85 {dimension_numbers = #tpu.dot_dimension_numbers<[1], [0], [0], [1], [0, 0, 1, 1], [], []>} : vector<16x256xbf16>, vector<256x64xbf16>, vector<16x64xf32> -> vector<16x64xf32>
    %c0_86 = arith.constant 0 : index
    %c0_87 = arith.constant 0 : index
    %c0_88 = arith.constant 0 : index
    %268 = vector.load %arg14[%c0_86, %c0_87, %c0_88] : memref<1x1x64xf32, #tpu.memory_space<vmem>>, vector<1x1x64xf32>
    %269 = vector.shape_cast %268 : vector<1x1x64xf32> to vector<1x64xf32>
    %270 = vector.broadcast %269 : vector<1x64xf32> to vector<16x64xf32>
    %271 = arith.addf %267, %270 : vector<16x64xf32>
    %272 = arith.addf %271, %242 : vector<16x64xf32>
    %c0_89 = arith.constant 0 : index
    %c0_90 = arith.constant 0 : index
    %c0_91 = arith.constant 0 : index
    %273 = vector.load %arg15[%c0_89, %c0_90, %c0_91] : memref<1x1x64xf32, #tpu.memory_space<vmem>>, vector<1x1x64xf32>
    %274 = vector.shape_cast %273 : vector<1x1x64xf32> to vector<1x64xf32>
    %c0_92 = arith.constant 0 : index
    %c0_93 = arith.constant 0 : index
    %c0_94 = arith.constant 0 : index
    %275 = vector.load %arg16[%c0_92, %c0_93, %c0_94] : memref<1x1x64xf32, #tpu.memory_space<vmem>>, vector<1x1x64xf32>
    %276 = vector.shape_cast %275 : vector<1x1x64xf32> to vector<1x64xf32>
    %cst_95 = arith.constant dense<0.000000e+00> : vector<16xf32>
    %277 = vector.multi_reduction <add>, %272, %cst_95 [1] : vector<16x64xf32> to vector<16xf32>
    %278 = vector.shape_cast %277 : vector<16xf32> to vector<16x1xf32>
    %cst_96 = arith.constant 6.400000e+01 : f32
    %279 = vector.broadcast %cst_96 : f32 to vector<16x1xf32>
    %280 = arith.divf %278, %279 : vector<16x1xf32>
    %281 = vector.broadcast %280 : vector<16x1xf32> to vector<16x64xf32>
    %282 = arith.subf %272, %281 : vector<16x64xf32>
    %283 = arith.mulf %282, %282 : vector<16x64xf32>
    %cst_97 = arith.constant dense<0.000000e+00> : vector<16xf32>
    %284 = vector.multi_reduction <add>, %283, %cst_97 [1] : vector<16x64xf32> to vector<16xf32>
    %285 = vector.shape_cast %284 : vector<16xf32> to vector<16x1xf32>
    %cst_98 = arith.constant 6.400000e+01 : f32
    %286 = vector.broadcast %cst_98 : f32 to vector<16x1xf32>
    %287 = arith.divf %285, %286 : vector<16x1xf32>
    %cst_99 = arith.constant 9.99999996E-13 : f32
    %288 = vector.broadcast %cst_99 : f32 to vector<16x1xf32>
    %289 = arith.addf %287, %288 : vector<16x1xf32>
    %290 = math.rsqrt %289 : vector<16x1xf32>
    %291 = vector.broadcast %290 : vector<16x1xf32> to vector<16x64xf32>
    %292 = arith.mulf %282, %291 : vector<16x64xf32>
    %293 = vector.broadcast %274 : vector<1x64xf32> to vector<16x64xf32>
    %294 = arith.mulf %292, %293 : vector<16x64xf32>
    %295 = vector.broadcast %276 : vector<1x64xf32> to vector<16x64xf32>
    %296 = arith.addf %294, %295 : vector<16x64xf32>
    %c0_100 = arith.constant 0 : index
    %c0_101 = arith.constant 0 : index
    %297 = vector.load %arg21[%c0_100, %c0_101] : memref<16x64xf32, #tpu.memory_space<vmem>>, vector<16x64xf32>
    tpu.vector_store %arg21[%c0_100, %c0_101], %296 {strides = array<i32>} : memref<16x64xf32, #tpu.memory_space<vmem>>, vector<16x64xf32>,
    %c1_i32 = arith.constant 1 : i32
    %298 = arith.cmpi eq, %arg0, %c1_i32 : i32
    %299 = arith.extui %298 : i1 to i32
    %c0_i32_102 = arith.constant 0 : i32
    %300 = arith.cmpi ne, %299, %c0_i32_102 : i32
    scf.if %300 {
      %301 = vector.extract_strided_slice %296 {offsets = [0, 0], sizes = [1, 64], strides = [1, 1]} : vector<16x64xf32> to vector<1x64xf32>
      %302 = vector.extract_strided_slice %296 {offsets = [8, 0], sizes = [1, 64], strides = [1, 1]} : vector<16x64xf32> to vector<1x64xf32>
      %303 = tpu.concatenate %301, %302 in 0 : vector<1x64xf32>, vector<1x64xf32> -> vector<2x64xf32>
      %304 = arith.truncf %303 : vector<2x64xf32> to vector<2x64xbf16>
      %c0_103 = arith.constant 0 : index
      %c0_104 = arith.constant 0 : index
      %305 = vector.load %arg17[%c0_103, %c0_104] : memref<64x64xbf16, #tpu.memory_space<vmem>>, vector<64x64xbf16>
      %cst_105 = arith.constant dense<0.000000e+00> : vector<2x64xf32>
      %306 = tpu.matmul %304, %305, %cst_105 {dimension_numbers = #tpu.dot_dimension_numbers<[1], [0], [0], [1], [0, 0, 1, 1], [], []>} : vector<2x64xbf16>, vector<64x64xbf16>, vector<2x64xf32> -> vector<2x64xf32>
      %c0_106 = arith.constant 0 : index
      %c0_107 = arith.constant 0 : index
      %307 = vector.load %arg18[%c0_106, %c0_107] : memref<1x64xf32, #tpu.memory_space<vmem>>, vector<1x64xf32>
      %308 = vector.broadcast %307 : vector<1x64xf32> to vector<2x64xf32>
      %309 = arith.addf %306, %308 : vector<2x64xf32>
      %310 = math.tanh %309 : vector<2x64xf32>
      %c0_108 = arith.constant 0 : index
      %c0_109 = arith.constant 0 : index
      %311 = vector.load %arg19[%c0_108, %c0_109] : memref<1x64xf32, #tpu.memory_space<vmem>>, vector<1x64xf32>
      %312 = vector.broadcast %311 : vector<1x64xf32> to vector<2x64xf32>
      %313 = arith.mulf %310, %312 : vector<2x64xf32>
      %cst_110 = arith.constant dense<0.000000e+00> : vector<2xf32>
      %314 = vector.multi_reduction <add>, %313, %cst_110 [1] : vector<2x64xf32> to vector<2xf32>
      %315 = vector.shape_cast %314 : vector<2xf32> to vector<2x1xf32>
      %c0_111 = arith.constant 0 : index
      %c0_112 = arith.constant 0 : index
      %316 = vector.load %arg20[%c0_111, %c0_112] : memref<1x1xf32, #tpu.memory_space<vmem>>, vector<1x1xf32>
      %317 = vector.broadcast %316 : vector<1x1xf32> to vector<2x1xf32>
      %318 = arith.addf %315, %317 : vector<2x1xf32>
      %cst_113 = arith.constant 0.000000e+00 : f32
      %319 = vector.broadcast %cst_113 : f32 to vector<2x1xf32>
      %320 = arith.subf %319, %318 : vector<2x1xf32>
      %321 = math.exp %320 : vector<2x1xf32>
      %cst_114 = arith.constant 1.000000e+00 : f32
      %322 = vector.broadcast %cst_114 : f32 to vector<2x1xf32>
      %323 = arith.addf %322, %321 : vector<2x1xf32>
      %324 = tpu.reciprocal %323 {approx = true} : vector<2x1xf32> -> vector<2x1xf32>
      %325 = vector.shape_cast %324 : vector<2x1xf32> to vector<2x1xf32>
      %326 = vector.broadcast %325 : vector<2x1xf32> to vector<2x64xf32>
      %327 = tpu.concatenate %310, %326 in 1 : vector<2x64xf32>, vector<2x64xf32> -> vector<2x128xf32>
      %c0_115 = arith.constant 0 : index
      %c0_116 = arith.constant 0 : index
      %328 = vector.load %arg23[%c0_115, %c0_116] : memref<2x128xf32, #tpu.memory_space<vmem>>, vector<2x128xf32>
      tpu.vector_store %arg23[%c0_115, %c0_116], %327 {strides = array<i32>} : memref<2x128xf32, #tpu.memory_space<vmem>>, vector<2x128xf32>,
    } else {
    }
    return
  }
  func.func @transform_0(%arg0: i32) -> (i32, i32) {
    %c0_i32 = arith.constant 0 : i32
    %c0_i32_0 = arith.constant 0 : i32
    %c0_i32_1 = arith.constant 0 : i32
    return %c0_i32, %c0_i32_0 : i32, i32
  }
  func.func @transform_1(%arg0: i32) -> (i32, i32) {
    %c0_i32 = arith.constant 0 : i32
    %c0_i32_0 = arith.constant 0 : i32
    %c0_i32_1 = arith.constant 0 : i32
    return %c0_i32, %c0_i32_0 : i32, i32
  }
  func.func @transform_2(%arg0: i32) -> (i32, i32) {
    %c0_i32 = arith.constant 0 : i32
    %c0_i32_0 = arith.constant 0 : i32
    %c0_i32_1 = arith.constant 0 : i32
    return %c0_i32, %c0_i32_0 : i32, i32
  }
  func.func @transform_3(%arg0: i32) -> (i32, i32) {
    %c0_i32 = arith.constant 0 : i32
    %c0_i32_0 = arith.constant 0 : i32
    %c0_i32_1 = arith.constant 0 : i32
    return %c0_i32, %c0_i32_0 : i32, i32
  }
  func.func @transform_4(%arg0: i32) -> (i32, i32, i32) {
    %c0_i32 = arith.constant 0 : i32
    %c0_i32_0 = arith.constant 0 : i32
    %c0_i32_1 = arith.constant 0 : i32
    return %arg0, %c0_i32, %c0_i32_0 : i32, i32, i32
  }
  func.func @transform_5(%arg0: i32) -> (i32, i32, i32) {
    %c0_i32 = arith.constant 0 : i32
    %c0_i32_0 = arith.constant 0 : i32
    %c0_i32_1 = arith.constant 0 : i32
    return %arg0, %c0_i32, %c0_i32_0 : i32, i32, i32
  }
  func.func @transform_6(%arg0: i32) -> (i32, i32, i32) {
    %c0_i32 = arith.constant 0 : i32
    %c0_i32_0 = arith.constant 0 : i32
    %c0_i32_1 = arith.constant 0 : i32
    return %arg0, %c0_i32, %c0_i32_0 : i32, i32, i32
  }
  func.func @transform_7(%arg0: i32) -> (i32, i32, i32) {
    %c0_i32 = arith.constant 0 : i32
    %c0_i32_0 = arith.constant 0 : i32
    %c0_i32_1 = arith.constant 0 : i32
    return %arg0, %c0_i32, %c0_i32_0 : i32, i32, i32
  }
  func.func @transform_8(%arg0: i32) -> (i32, i32, i32) {
    %c0_i32 = arith.constant 0 : i32
    %c0_i32_0 = arith.constant 0 : i32
    %c0_i32_1 = arith.constant 0 : i32
    return %arg0, %c0_i32, %c0_i32_0 : i32, i32, i32
  }
  func.func @transform_9(%arg0: i32) -> (i32, i32, i32) {
    %c0_i32 = arith.constant 0 : i32
    %c0_i32_0 = arith.constant 0 : i32
    %c0_i32_1 = arith.constant 0 : i32
    return %arg0, %c0_i32, %c0_i32_0 : i32, i32, i32
  }
  func.func @transform_10(%arg0: i32) -> (i32, i32, i32) {
    %c0_i32 = arith.constant 0 : i32
    %c0_i32_0 = arith.constant 0 : i32
    %c0_i32_1 = arith.constant 0 : i32
    return %arg0, %c0_i32, %c0_i32_0 : i32, i32, i32
  }
  func.func @transform_11(%arg0: i32) -> (i32, i32, i32) {
    %c0_i32 = arith.constant 0 : i32
    %c0_i32_0 = arith.constant 0 : i32
    %c0_i32_1 = arith.constant 0 : i32
    return %arg0, %c0_i32, %c0_i32_0 : i32, i32, i32
  }
  func.func @transform_12(%arg0: i32) -> (i32, i32, i32) {
    %c0_i32 = arith.constant 0 : i32
    %c0_i32_0 = arith.constant 0 : i32
    %c0_i32_1 = arith.constant 0 : i32
    return %arg0, %c0_i32, %c0_i32_0 : i32, i32, i32
  }
  func.func @transform_13(%arg0: i32) -> (i32, i32, i32) {
    %c0_i32 = arith.constant 0 : i32
    %c0_i32_0 = arith.constant 0 : i32
    %c0_i32_1 = arith.constant 0 : i32
    return %arg0, %c0_i32, %c0_i32_0 : i32, i32, i32
  }
  func.func @transform_14(%arg0: i32) -> (i32, i32, i32) {
    %c0_i32 = arith.constant 0 : i32
    %c0_i32_0 = arith.constant 0 : i32
    %c0_i32_1 = arith.constant 0 : i32
    return %arg0, %c0_i32, %c0_i32_0 : i32, i32, i32
  }
  func.func @transform_15(%arg0: i32) -> (i32, i32, i32) {
    %c0_i32 = arith.constant 0 : i32
    %c0_i32_0 = arith.constant 0 : i32
    %c0_i32_1 = arith.constant 0 : i32
    return %arg0, %c0_i32, %c0_i32_0 : i32, i32, i32
  }
  func.func @transform_16(%arg0: i32) -> (i32, i32) {
    %c0_i32 = arith.constant 0 : i32
    %c0_i32_0 = arith.constant 0 : i32
    %c0_i32_1 = arith.constant 0 : i32
    return %c0_i32, %c0_i32_0 : i32, i32
  }
  func.func @transform_17(%arg0: i32) -> (i32, i32) {
    %c0_i32 = arith.constant 0 : i32
    %c0_i32_0 = arith.constant 0 : i32
    %c0_i32_1 = arith.constant 0 : i32
    return %c0_i32, %c0_i32_0 : i32, i32
  }
  func.func @transform_18(%arg0: i32) -> (i32, i32) {
    %c0_i32 = arith.constant 0 : i32
    %c0_i32_0 = arith.constant 0 : i32
    %c0_i32_1 = arith.constant 0 : i32
    return %c0_i32, %c0_i32_0 : i32, i32
  }
  func.func @transform_19(%arg0: i32) -> (i32, i32) {
    %c0_i32 = arith.constant 0 : i32
    %c0_i32_0 = arith.constant 0 : i32
    %c0_i32_1 = arith.constant 0 : i32
    return %c0_i32, %c0_i32_0 : i32, i32
  }
  func.func @transform_20(%arg0: i32) -> (i32, i32) {
    %c0_i32 = arith.constant 0 : i32
    %c0_i32_0 = arith.constant 0 : i32
    %c0_i32_1 = arith.constant 0 : i32
    return %c0_i32, %c0_i32_0 : i32, i32
  }
  func.func @transform_21(%arg0: i32) -> (i32, i32, i32) {
    %c0_i32 = arith.constant 0 : i32
    %c0_i32_0 = arith.constant 0 : i32
    %c0_i32_1 = arith.constant 0 : i32
    return %arg0, %c0_i32, %c0_i32_0 : i32, i32, i32
  }
  func.func @transform_22(%arg0: i32) -> (i32, i32) {
    %c0_i32 = arith.constant 0 : i32
    %c0_i32_0 = arith.constant 0 : i32
    %c0_i32_1 = arith.constant 0 : i32
    return %c0_i32, %c0_i32_0 : i32, i32
  }
}

</mosaic_0001>

<bundles_post_ra>
// kernel: model_forward.1
= control target key start
LH: loop header
LB: loop body
LE: loop exit
PB: predicated region body
PF: predicated region fallthrough
CT: control target
= control target key end

     0   :  { %s3912_s0 = inlined_call_operand.vmem [shape: f32[16,64], index: 0, kind: input, shape index: {}]   ;;  %s3913_s1 = inlined_call_operand.vmem [shape: f32[1,64], index: 1, kind: input, shape index: {}]   ;;  %s3914_s2 = inlined_call_operand.vmem [shape: f32[1,64], index: 2, kind: input, shape index: {}]   ;;  %s3915_s3 = inlined_call_operand.vmem [shape: f32[2,8], index: 3, kind: input, shape index: {}]   ;;  %s3916_s4 = inlined_call_operand.vmem [shape: bf16[2,64,192], index: 4, kind: input, shape index: {}]   ;;  %s3917_s5 = inlined_call_operand.vmem [shape: f32[2,1,192], index: 5, kind: input, shape index: {}]   ;;  %s3918_s6 = inlined_call_operand.vmem [shape: bf16[2,64,64], index: 6, kind: input, shape index: {}]   ;;  %s3919_s7 = inlined_call_operand.vmem [shape: f32[2,1,64], index: 7, kind: input, shape index: {}]   ;;  %s3920_s8 = inlined_call_operand.vmem [shape: f32[2,1,64], index: 8, kind: input, shape index: {}]   ;;  %s3921_s9 = inlined_call_operand.vmem [shape: f32[2,1,64], index: 9, kind: input, shape index: {}]   ;;  %s3922_s10 = inlined_call_operand.vmem [shape: bf16[2,64,256], index: 10, kind: input, shape index: {}]   ;;  %s3923_s11 = inlined_call_operand.vmem [shape: f32[2,1,256], index: 11, kind: input, shape index: {}]   ;;  %s3924_s12 = inlined_call_operand.vmem [shape: bf16[2,256,64], index: 12, kind: input, shape index: {}]   ;;  %s3925_s13 = inlined_call_operand.vmem [shape: f32[2,1,64], index: 13, kind: input, shape index: {}]   ;;  %s3926_s14 = inlined_call_operand.vmem [shape: f32[2,1,64], index: 14, kind: input, shape index: {}]   ;;  %s3927_s15 = inlined_call_operand.vmem [shape: f32[2,1,64], index: 15, kind: input, shape index: {}]   ;;  %s3928_s16 = inlined_call_operand.vmem [shape: bf16[64,64], index: 16, kind: input, shape index: {}]   ;;  %s3929_s17 = inlined_call_operand.vmem [shape: f32[1,64], index: 17, kind: input, shape index: {}]   ;;  %s3930_s18 = inlined_call_operand.vmem [shape: f32[1,64], index: 18, kind: input, shape index: {}]   ;;  %s3931_s19 = inlined_call_operand.<no memory space> [shape: f32[1,1], index: 19, kind: input, shape index: {}]   ;;  %s3932_s20 = inlined_call_operand.hbm [shape: f32[16,64], index: 20, kind: output, shape index: {0}]   ;;  %s3933_s21 = inlined_call_operand.vmem [shape: f32[2,16,32], index: 21, kind: output, shape index: {1}]   ;;  %s3934_s22 = inlined_call_operand.vmem [shape: f32[2,128], index: 22, kind: output, shape index: {2}]  }
   0x1   :  { %3941 = sst [smem:[#allocation9_spill]] %s3912_s0  ;;  %v28_v0 = vstv %s3931_s19 }
   0x2   :  { %3942 = sst [smem:[#allocation10_spill]] %s3913_s1  ;;  %29 = vst [vmem:[#allocation2] sm:$0x1] %v28_v0 }
   0x3   :  { %3943 = sst [smem:[#allocation11_spill]] %s3914_s2 }
   0x4   :  { %3944 = sst [smem:[#allocation12_spill]] %s3915_s3 }
   0x5   :  { %3945 = sst [smem:[#allocation13_spill]] %s3916_s4 }
   0x6   :  { %3946 = sst [smem:[#allocation14_spill]] %s3917_s5 }
   0x7   :  { %3947 = sst [smem:[#allocation15_spill]] %s3918_s6 }
   0x8   :  { %3948 = sst [smem:[#allocation16_spill]] %s3922_s10 }
   0x9   :  { %3949 = sst [smem:[#allocation17_spill]] %s3928_s16 }
   0xa   :  { %3950 = sst [smem:[#allocation18_spill]] %s3929_s17 }
   0xb   :  { %3951 = sst [smem:[#allocation19_spill]] %s3930_s18 }
   0xc   :  { %3952 = sst [smem:[#allocation20_spill]] %s3932_s20 }
   0xd   :  { %3953 = sst [smem:[#allocation21_spill]] %s3934_s22 }
   0xe   :  { %30 = vsyncpa [#allocation4], 0  ;;  %s3433_s29 = smov 0  }
   0xf LB: > { %3954 = sst [smem:[#allocation6_spill]] %s3296_s29  ;;  %s3439_s30 = sadd.s32 4294967295, %s3296_s29   ;;  %s3296_s29 = sphi %s3433_s29, %s36_s29  }
  0x10   : > { %3955 = sst [smem:[#allocation7_spill]] %s3439_s30  ;;  %p2828_p0 = scmp.ge.s32.totalorder %s3296_s29, 1 }
  0x11   : > { %p706_p1 = scmp.lt.s32.totalorder %s3296_s29, 3 }
  0x13   : > { %p707_p2 = pnand %p2828_p0, %p706_p1 }
  0x15   : > { %710 = sbr.rel (%p707_p2) target bundleno = 3578 (0xdfa), region = 100 }
  0x1c   : > { %p809_p3 = scmp.lt.s32.totalorder %s3439_s30, 1  ;;  %s3956_s5 = sld [smem:[#allocation13_spill]] }
  0x1d   : > { %s3957_s26 = sld [smem:[#allocation14_spill]]  ;;  %s3959_s18 = sld [smem:[#allocation15_spill]] }
  0x1e   : > { %s3445_s19 = scalar_select %p809_p3, %s3439_s30, 1 }
  0x1f   : > { %s3960_s10 = sld [smem:[#allocation16_spill]] }
  0x20   : > { %s2918_s4 = sshll.u32 %s3445_s19, 6  ;;  %s2831_s0 = sshll.u32 %s3445_s19, 1 }
  0x21   : > { %s2919_s27 = sshll.u32 %s3445_s19, 5  ;;  %s3485_s29 = scalar_lea.vmem %s3923_s11, %s2831_s0 }
  0x22   : > { %s3452_s24 = scalar_lea.vmem %s3956_s5, %s2918_s4  ;;  %s848_s1 = scalar_lea.vmem %s3925_s13, %s3445_s19 }
  0x23   : > { %s3457_s2 = scalar_lea.vmem %s3957_s26, %s2831_s0  ;;  %s3467_s17 = scalar_lea.vmem %s3959_s18, %s2919_s27 }
  0x24   : > { %3958 = sst [smem:[#allocation8_spill]] %s3457_s2  ;;  %s2921_s18 = sshll.u32 %s3445_s19, 7 }
  0x25   : > { %s3480_s2 = scalar_lea.vmem %s3960_s10, %s2918_s4  ;;  %s3491_s16 = scalar_lea.vmem %s3924_s12, %s2921_s18 }
  0x26   : > { %s851_s4 = scalar_lea.vmem %s3926_s14, %s3445_s19  ;;  %s854_s3 = scalar_lea.vmem %s3927_s15, %s3445_s19 }
  0x27   : > { %s2922_s0 = sshll.u32 %s3445_s19, 4  ;;  %s3961_s18 = sld [smem:[#allocation7_spill]] }
  0x28   : > { %s3509_s10 = scalar_lea.vmem %s3933_s21, %s2922_s0 }
  0x2d   : > { %p2841_p4 = scmp.ne.s32.totalorder %s3961_s18, 0 }
  0x2e   : > { %s3962_s30 = sld [smem:[#allocation9_spill]] (!%p2841_p4)  ;;  %vm869_vm0 = vcmask (!%p2841_p4), 523264   ;;  %s3963_s25 = sld [smem:[#allocation10_spill]] (!%p2841_p4) }
  0x2f   : > { %864 = sbr.rel (%p2841_p4) target bundleno = 371 (0x173), region = 104  ;;  %s3964_s28 = sld [smem:[#allocation11_spill]] (!%p2841_p4) }
  0x34   : > { %v865_v1 = vld [vmem:[%s3962_s30] sm:$0xff] (!%p2841_p4)  ;;  %v866_v2 = vld [vmem:[%s3962_s30 + $0x8] sm:$0xff] (!%p2841_p4) }
  0x35   : > { %v870_v3 = vsel (!%p2841_p4), %vm869_vm0, %v865_v1, 0.0  ;;  %v873_v4 = vsel (!%p2841_p4), %vm869_vm0, %v866_v2, 0.0  ;;  %v2842_v22 = vld [vmem:[%s3963_s25] ss:$0 sm:$0xff] (!%p2841_p4) }
  0x36   : > { %871 = vadd.xlane.f32.xlu0 %v870_v3  ;;  %v2843_v24 = vld [vmem:[%s3964_s28] ss:$0 sm:$0xff] }
  0x3a   : > { %874 = vadd.xlane.f32.xlu0 %v873_v4 }
  0xc3   : > { %v872_v5 = vpop.xlane.xlu0 %871 }
  0xc4   : > { %v877_v6 = vmul.f32 0.015625, %v872_v5 }
  0xc6   : > { %v879_v7 = vsub.f32 %v865_v1, %v877_v6 }
  0xc7   : > { %v875_v8 = vpop.xlane.xlu0 %874 }
  0xc8   : > { %v878_v9 = vmul.f32 0.015625, %v875_v8  ;;  %v881_v10 = vmul.f32 %v879_v7, %v879_v7 }
  0xca   : > { %v880_v11 = vsub.f32 %v866_v2, %v878_v9  ;;  %v883_v12 = vsel %vm869_vm0, %v881_v10, 0.0 }
  0xcb   : > { %884 = vadd.xlane.f32.xlu1 %v883_v12 }
  0xcc   : > { %v882_v13 = vmul.f32 %v880_v11, %v880_v11 }
  0xce   : > { %v886_v14 = vsel %vm869_vm0, %v882_v13, 0.0 }
  0xcf   : > { %887 = vadd.xlane.f32.xlu1 %v886_v14 }
 0x158   : > { %v885_v15 = vpop.xlane.xlu1 %884 }
 0x159   : > { %v889_v16 = vmul.f32 0.015625, %v885_v15 }
 0x15b   : > { %v891_v17 = vadd.f32 1e-12, %v889_v16 }
 0x15c   : > { %v888_v18 = vpop.xlane.xlu1 %887 }
 0x15d   : > { %3138 = vrsqrt.f32 %v891_v17  ;;  %v890_v19 = vmul.f32 0.015625, %v888_v18 }
 0x15f   : > { %v892_v20 = vadd.f32 1e-12, %v890_v19 }
 0x161   : > { %3140 = vrsqrt.f32 %v892_v20 }
 0x167   : > { %v3139_v21 = vpop.eup %3138 }
 0x168   : > { %v895_v23 = vmul.f32 %v3139_v21, %v879_v7 }
 0x16a   : > { %v903_v25 = vmul.f32 %v2842_v22, %v895_v23 }
 0x16b   : > { %v3141_v26 = vpop.eup %3140 }
 0x16c   : > { %v911_v27 = vadd.f32 %v2843_v24, %v903_v25  ;;  %v896_v28 = vmul.f32 %v3141_v26, %v880_v11 }
 0x16e   : > { %913 = vst.msk [vmem:[#allocation3] sm:$0xff] %vm869_vm0, %v911_v27  ;;  %v904_v29 = vmul.f32 %v2842_v22, %v896_v28 }
 0x170   : > { %v912_v30 = vadd.f32 %v2843_v24, %v904_v29 }
 0x172   : > { %914 = vst.msk [vmem:[#allocation3 + $0x8] sm:$0xff] %vm869_vm0, %v912_v30 }
 0x173 PF: > { %v3157_v31 = vld [vmem:[%s3452_s24 + $0x4] ss:$8 sps:$4 sm:$0xff]   ;;  %v3159_v32 = vld [vmem:[%s3452_s24] ss:$8 sps:$4 sm:$0xff]   ;;  %v3298_v33 = vmov 0   ;;  %s3965_s18 = sld [smem:[#allocation8_spill]]  ;;  %v928_v43 = vlaneseq }
 0x174   : > { %1014 = vmatprep.mubr.bf16.mxu1 %v3298_v33  ;;  %982 = vmatprep.subr.bf16.mxu1 %v3157_v31  ;;  %v3160_v34 = vld [vmem:[%s3452_s24 + $0x14] ss:$8 sps:$4 sm:$0xff]   ;;  %v3162_v35 = vld [vmem:[%s3452_s24 + $0x10] ss:$8 sps:$4 sm:$0xff]   ;;  %v3163_v36 = vld [vmem:[%s3452_s24 + $0x24] ss:$8 sps:$4 sm:$0xff]  }
 0x175   : > { %983 = vmatpush1.bf16.msra.mxu1 %v3159_v32  ;;  %v3165_v37 = vld [vmem:[%s3452_s24 + $0x20] ss:$8 sps:$4 sm:$0xff]   ;;  %v3166_v38 = vld [vmem:[%s3452_s24 + $0x34] ss:$8 sps:$4 sm:$0xff]   ;;  %v3168_v39 = vld [vmem:[%s3452_s24 + $0x30] ss:$8 sps:$4 sm:$0xff]  }
 0x176   : > { %984 = vmatprep.subr.bf16.mxu1 %v3160_v34  ;;  %v3539_v40 = vld [vmem:[#allocation3] sm:$0xff]  ;;  %vm978_vm1 = vcmask 523264   ;;  %v929_v44 = vshrl.u32 %v928_v43, 7  ;;  %v3299_v45 = vmov 0.0   ;;  %vm3300_vm2 = vmmov 0   ;;  %s3301_s24 = smov 112  }
 0x177   : > { %2999 = vmatprep.subr.bf16.mxu0 %v3299_v45  ;;  %3001 = vmatprep.mubr.msk.bf16.mxu0 %vm3300_vm2, %v3299_v45  ;;  %s3302_s20 = smov 64   ;;  %s3303_s22 = smov 32   ;;  %vm1030_vm3 = vcmask 130048   ;;  %vm1100_vm4 = vcmask 1043456   ;;  %vm1083_vm5 = vcmask 64512   ;;  %vm1494_vm6 = vcmask 261120  }
 0x178   : > { %v3548_v46 = vsub.s32 0, %v929_v44  ;;  %v3552_v49 = vsub.s32 1, %v929_v44  ;;  %s3304_s6 = smov 48   ;;  %s3305_s27 = smov 16   ;;  %vm1496_vm7 = vcmask 392192   ;;  %vm1512_vm8 = vcmask 195584  }
 0x179   : > { %985 = vmatpush1.bf16.msra.mxu1 %v3162_v35  ;;  %v3541_v41 = vld [vmem:[#allocation3 + $0x8] sm:$0xff]  ;;  %v926_v47 = vld [vmem:[%s3965_s18] sm:$0x3]  ;;  %s3306_s23 = smov 96   ;;  %s3307_s5 = smov 80  }
 0x17a   : > { %986 = vmatprep.subr.bf16.mxu1 %v3163_v36  ;;  %v917_v42 = vpack.c.bf16 %v3541_v41, %v3539_v40  ;;  %v931_v48 = vrot.slane %v926_v47, %v3548_v46  ;;  %v935_v53 = vrot.slane %v926_v47, %v3552_v49  ;;  %s3966_s0 = sld [smem:[#allocation12_spill]]  ;;  %s3967_s18 = scalar_lea.vmem %s3919_s7, %s3445_s19 }
 0x17d   : > { %987 = vmatpush1.bf16.msra.mxu1 %v3165_v37 }
 0x17e   : > { %988 = vmatprep.subr.bf16.mxu1 %v3166_v38 }
 0x180   : > { %v1025_v21 = vld [vmem:[%s3966_s0] sm:$0x3] }
 0x181   : > { %989 = vmatpush1.bf16.msra.mxu1 %v3168_v39  ;;  %v1081_v22 = vrot.slane %v1025_v21, %v3548_v46 }
 0x182   : > { %2987 = vmatprep.subr.bf16.mxu1 %v3299_v45 }
 0x184   : > { %2852 = vmatmul.mubr.msk.bf16.vlgmr.msra.gmra.mrb[0].mxu1 %vm978_vm1, %v917_v42 }
 0x185   : > { %2989 = vmatprep.mubr.msk.bf16.mxu1 %vm3300_vm2, %v3299_v45 }
 0x257   : > { %v1016_v50 = vpop.f32.mrb[0].mxu1 }
 0x258   : > { %v1017_v51 = vadd.f32 %v1016_v50, %v931_v48  ;;  %v1018_v52 = vpop.f32.mrb[1].mxu1 }
 0x259   : > { %v1020_v54 = vpop.f32.mrb[2].mxu1  ;;  %v1019_v61 = vadd.f32 %v1018_v52, %v935_v53 }
 0x25a   : > { %v1026_v55 = vpack.c.bf16 %v1017_v51, %v1017_v51  ;;  %v1022_v56 = vpop.f32.mrb[3].mxu1  ;;  %v1021_v58 = vadd.f32 %v1020_v54, %v931_v48 }
 0x25b   : > { %v3559_v57 = vadd.f32 %v1022_v56, %v935_v53  ;;  %v3575_v1 = vpack.c.bf16 %v1019_v61, %v1019_v61 }
 0x25c   : > { %1144 = vrot.lane.b32.xlu1 %v1026_v55, %s3301_s24  ;;  %1028 = vrot.lane.b32.xlu0 %v1026_v55, %s3302_s20  ;;  %v1514_v59 = vpack.c.bf16 %v1021_v58, %v1021_v58  ;;  %v1568_v58 = vrot.slane %v1025_v21, %v3552_v49 }
 0x25d   : > { %v1102_v3 = vsel %vm1100_vm4, %v3575_v1, 0 }
 0x260   : > { %1259 = vrot.lane.b32.xlu1 %v1026_v55, %s3303_s22  ;;  %1146 = vrot.lane.b32.xlu0 %v1026_v55, %s3304_s6 }
 0x264   : > { %1371 = vrot.lane.b32.xlu1 %v1026_v55, %s3305_s27  ;;  %1257 = vrot.lane.b32.xlu0 %v1026_v55, %s3306_s23 }
 0x268   : > { %1516 = vrot.lane.b32.xlu1 %v1514_v59, %s3302_s20  ;;  %1369 = vrot.lane.b32.xlu0 %v1026_v55, %s3307_s5 }
 0x26c   : > { %1629 = vrot.lane.b32.xlu1 %v1514_v59, %s3301_s24  ;;  %1631 = vrot.lane.b32.xlu0 %v1514_v59, %s3304_s6 }
 0x270   : > { %1742 = vrot.lane.b32.xlu1 %v1514_v59, %s3306_s23  ;;  %1744 = vrot.lane.b32.xlu0 %v1514_v59, %s3303_s22 }
 0x274   : > { %1854 = vrot.lane.b32.xlu1 %v1514_v59, %s3307_s5  ;;  %1856 = vrot.lane.b32.xlu0 %v1514_v59, %s3305_s27 }
 0x2ce   : > { %v1029_v60 = vpop.permute.xlu0 %1028  ;;  %v1145_v63 = vpop.permute.xlu1 %1144 }
 0x2cf   : > { %v1035_v62 = vsel %vm1030_vm3, %v1029_v60, 0 }
 0x2d0   : > { %2988 = vmatpush3.bf16.xpose.msra.mxu1 %v1035_v62 }
 0x2d1   : > { %2993 = vmatprep.subr.bf16.mxu1 %v3299_v45 }
 0x2d2   : > { %v1147_v0 = vpop.permute.xlu0 %1146  ;;  %v1260_v4 = vpop.permute.xlu1 %1259 }
 0x2d3   : > { %v1152_v2 = vsel %vm1030_vm3, %v1147_v0, 0  ;;  %v1265_v5 = vsel %vm1030_vm3, %v1260_v4, 0 }
 0x2d4   : > { %3000 = vmatpush3.bf16.xpose.msra.mxu0 %v1152_v2 }
 0x2d5   : > { %3011 = vmatprep.subr.bf16.mxu0 %v3299_v45 }
 0x2d6   : > { %v1372_v6 = vpop.permute.xlu1 %1371  ;;  %v1258_v7 = vpop.permute.xlu0 %1257 }
 0x2d7   : > { %2990 = vmatmul.mubr.msk.bf16.vlgmr.msra.gmra.mrb[4].mxu1 %vm1030_vm3, %v1026_v55  ;;  %v1377_v8 = vsel %vm1030_vm3, %v1372_v6, 0 }
 0x2d8   : > { %2994 = vmatpush3.bf16.msra.mxu1 %v1102_v3  ;;  %2995 = vmatprep.mubr.msk.bf16.mxu1 %vm3300_vm2, %v3299_v45 }
 0x2d9   : > { %3005 = vmatprep.subr.bf16.mxu1 %v3299_v45 }
 0x2da   : > { %v1517_v9 = vpop.permute.xlu1 %1516  ;;  %v1370_v10 = vpop.permute.xlu0 %1369 }
 0x2db   : > { %3002 = vmatmul.mubr.msk.bf16.vlgmr.msra.gmra.mrb[0].mxu0 %vm1030_vm3, %v1145_v63  ;;  %v1522_v11 = vsel %vm1030_vm3, %v1517_v9, 0 }
 0x2dc   : > { %3012 = vmatpush3.bf16.xpose.msra.mxu0 %v1265_v5  ;;  %3013 = vmatprep.mubr.msk.bf16.mxu0 %vm3300_vm2, %v3299_v45 }
 0x2dd   : > { %3023 = vmatprep.subr.bf16.mxu0 %v3299_v45 }
 0x2de   : > { %v1632_v12 = vpop.permute.xlu0 %1631  ;;  %v1630_v15 = vpop.permute.xlu1 %1629 }
 0x2df   : > { %v1637_v13 = vsel %vm1030_vm3, %v1632_v12, 0 }
 0x2e2   : > { %v1745_v14 = vpop.permute.xlu0 %1744  ;;  %v1743_v18 = vpop.permute.xlu1 %1742 }
 0x2e3   : > { %3014 = vmatmul.mubr.msk.bf16.vlgmr.msra.gmra.mrb[4].mxu0 %vm1030_vm3, %v1258_v7  ;;  %v1750_v16 = vsel %vm1030_vm3, %v1745_v14, 0 }
 0x2e4   : > { %3024 = vmatpush3.bf16.xpose.msra.mxu0 %v1377_v8  ;;  %3025 = vmatprep.mubr.msk.bf16.mxu0 %vm3300_vm2, %v3299_v45 }
 0x2e5   : > { %3035 = vmatprep.subr.bf16.mxu0 %v3299_v45 }
 0x2e6   : > { %v1857_v17 = vpop.permute.xlu0 %1856  ;;  %v1855_v20 = vpop.permute.xlu1 %1854 }
 0x2e7   : > { %v1862_v19 = vsel %vm1030_vm3, %v1857_v17, 0 }
 0x2eb   : > { %3026 = vmatmul.mubr.msk.bf16.vlgmr.msra.gmra.mrb[8].mxu0 %vm1030_vm3, %v1370_v10 }
 0x2ec   : > { %3036 = vmatpush3.bf16.xpose.msra.mxu0 %v1522_v11  ;;  %3037 = vmatprep.mubr.msk.bf16.mxu0 %vm3300_vm2, %v3299_v45 }
 0x2ed   : > { %3047 = vmatprep.subr.bf16.mxu0 %v3299_v45 }
 0x2f3   : > { %3038 = vmatmul.mubr.msk.bf16.vlgmr.msra.gmra.mrb[12].mxu0 %vm1030_vm3, %v1514_v59 }
 0x2f4   : > { %3048 = vmatpush3.bf16.xpose.msra.mxu0 %v1637_v13  ;;  %3049 = vmatprep.mubr.msk.bf16.mxu0 %vm3300_vm2, %v3299_v45 }
 0x2f5   : > { %3059 = vmatprep.subr.bf16.mxu0 %v3299_v45 }
 0x2fb   : > { %3050 = vmatmul.mubr.msk.bf16.vlgmr.msra.gmra.mrb[16].mxu0 %vm1030_vm3, %v1630_v15 }
 0x2fc   : > { %3060 = vmatpush3.bf16.xpose.msra.mxu0 %v1750_v16  ;;  %3061 = vmatprep.mubr.msk.bf16.mxu0 %vm3300_vm2, %v3299_v45 }
 0x2fd   : > { %3071 = vmatprep.subr.bf16.mxu0 %v3299_v45 }
 0x303   : > { %3062 = vmatmul.mubr.msk.bf16.vlgmr.msra.gmra.mrb[20].mxu0 %vm1030_vm3, %v1743_v18 }
 0x304   : > { %3072 = vmatpush3.bf16.xpose.msra.mxu0 %v1862_v19  ;;  %3073 = vmatprep.mubr.msk.bf16.mxu0 %vm3300_vm2, %v3299_v45 }
 0x305   : > { %3083 = vmatprep.subr.bf16.mxu0 %v3299_v45 }
 0x30b   : > { %3074 = vmatmul.mubr.msk.bf16.vlgmr.msra.gmra.mrb[24].mxu0 %vm1030_vm3, %v1855_v20 }
 0x30c   : > { %3091 = vmatprep.mubr.msk.bf16.mxu0 %vm3300_vm2, %v3299_v45 }
 0x3aa   : > { %v1071_v23 = vpop.f32.mrb[4].mxu1 }
 0x3ab   : > { %v1077_v24 = vmul.f32 0.25, %v1071_v23  ;;  %v2991_v25 = vpop.f32.mrb[5].mxu1 }
 0x3ac   : > { %v1074_v26 = vpop.f32.mrb[6].mxu1 }
 0x3ad   : > { %v2992_v27 = vpop.f32.mrb[7].mxu1  ;;  %v1082_v28 = vadd.f32 %v1081_v22, %v1077_v24 }
 0x3ae   : > { %v1188_v29 = vpop.f32.mrb[0].mxu0 }
 0x3af   : > { %v1194_v30 = vmul.f32 0.25, %v1188_v29  ;;  %v3003_v31 = vpop.f32.mrb[1].mxu0  ;;  %v1084_v32 = vsel %vm1083_vm5, %v1082_v28, -inf }
 0x3b0   : > { %1085 = vmax.xlane.f32.xlu0 %v1084_v32  ;;  %v1191_v34 = vpop.f32.mrb[2].mxu0 }
 0x3b1   : > { %v3004_v35 = vpop.f32.mrb[3].mxu0  ;;  %v1195_v36 = vadd.f32 %v1194_v30, %v1081_v22 }
 0x3b3   : > { %v1196_v37 = vsel %vm1083_vm5, %v1195_v36, -inf }
 0x3b4   : > { %1197 = vmax.xlane.f32.xlu1 %v1196_v37 }
 0x3b6   : > { %v1301_v38 = vpop.f32.mrb[4].mxu0 }
 0x3b7   : > { %v1307_v39 = vmul.f32 0.25, %v1301_v38  ;;  %v3015_v42 = vpop.f32.mrb[5].mxu0 }
 0x3b8   : > { %v1304_v43 = vpop.f32.mrb[6].mxu0 }
 0x3b9   : > { %v3016_v44 = vpop.f32.mrb[7].mxu0  ;;  %v1308_v47 = vadd.f32 %v1307_v39, %v1081_v22 }
 0x3bb   : > { %v1309_v48 = vsel %vm1083_vm5, %v1308_v47, -inf }
 0x3bc   : > { %1310 = vmax.xlane.f32.xlu0 %v1309_v48 }
 0x3be   : > { %v1413_v50 = vpop.f32.mrb[8].mxu0 }
 0x3bf   : > { %v1419_v51 = vmul.f32 0.25, %v1413_v50  ;;  %v3027_v52 = vpop.f32.mrb[9].mxu0 }
 0x3c0   : > { %v1416_v53 = vpop.f32.mrb[10].mxu0 }
 0x3c1   : > { %v3028_v54 = vpop.f32.mrb[11].mxu0  ;;  %v1420_v55 = vadd.f32 %v1419_v51, %v1081_v22 }
 0x3c3   : > { %v1421_v56 = vsel %vm1083_vm5, %v1420_v55, -inf }
 0x3c4   : > { %1422 = vmax.xlane.f32.xlu0 %v1421_v56 }
 0x3c6   : > { %v1558_v59 = vpop.f32.mrb[12].mxu0 }
 0x3c7   : > { %v1564_v60 = vmul.f32 0.25, %v1558_v59  ;;  %v3039_v61 = vpop.f32.mrb[13].mxu0 }
 0x3c8   : > { %v1561_v62 = vpop.f32.mrb[14].mxu0 }
 0x3c9   : > { %v3040_v63 = vpop.f32.mrb[15].mxu0  ;;  %v3627_v0 = vadd.f32 %v1568_v58, %v1564_v60 }
 0x3cb   : > { %v1570_v2 = vsel %vm1083_vm5, %v3627_v0, -inf }
 0x3cc   : > { %1571 = vmax.xlane.f32.xlu1 %v1570_v2 }
 0x3ce   : > { %v1673_v3 = vpop.f32.mrb[16].mxu0 }
 0x3cf   : > { %v1679_v4 = vmul.f32 0.25, %v1673_v3  ;;  %v3051_v5 = vpop.f32.mrb[17].mxu0 }
 0x3d0   : > { %v1676_v6 = vpop.f32.mrb[18].mxu0 }
 0x3d1   : > { %v3052_v7 = vpop.f32.mrb[19].mxu0  ;;  %v1680_v8 = vadd.f32 %v1679_v4, %v1568_v58 }
 0x3d2   : > { %v1582_v7 = vpack.c.bf16 %v3559_v57, %v3559_v57 }
 0x3d3   : > { %v1681_v9 = vsel %vm1083_vm5, %v1680_v8, -inf }
 0x3d4   : > { %1682 = vmax.xlane.f32.xlu0 %v1681_v9 }
 0x3d6   : > { %v1786_v10 = vpop.f32.mrb[20].mxu0 }
 0x3d7   : > { %v1792_v11 = vmul.f32 0.25, %v1786_v10  ;;  %v3063_v12 = vpop.f32.mrb[21].mxu0 }
 0x3d8   : > { %v1789_v13 = vpop.f32.mrb[22].mxu0 }
 0x3d9   : > { %v3064_v14 = vpop.f32.mrb[23].mxu0  ;;  %v1793_v15 = vadd.f32 %v1792_v11, %v1568_v58 }
 0x3db   : > { %v1794_v16 = vsel %vm1083_vm5, %v1793_v15, -inf }
 0x3dc   : > { %1795 = vmax.xlane.f32.xlu1 %v1794_v16 }
 0x3de   : > { %v1898_v17 = vpop.f32.mrb[24].mxu0 }
 0x3df   : > { %v1904_v18 = vmul.f32 0.25, %v1898_v17  ;;  %v3075_v19 = vpop.f32.mrb[25].mxu0 }
 0x3e0   : > { %v1901_v20 = vpop.f32.mrb[26].mxu0 }
 0x3e1   : > { %v3076_v21 = vpop.f32.mrb[27].mxu0  ;;  %v1905_v22 = vadd.f32 %v1904_v18, %v1568_v58 }
 0x3e3   : > { %v1906_v23 = vsel %vm1083_vm5, %v1905_v22, -inf }
 0x3e4   : > { %1907 = vmax.xlane.f32.xlu0 %v1906_v23 }
 0x43d   : > { %v1086_v24 = vpop.xlane.xlu0 %1085 }
 0x43e   : > { %v1087_v25 = vsub.f32 %v1082_v28, %v1086_v24 }
 0x440   : > { %v1088_v26 = vmul.f32 1.442695, %v1087_v25 }
 0x441   : > { %v1198_v27 = vpop.xlane.xlu1 %1197 }
 0x442   : > { %3201 = vpow2.f32 %v1088_v26  ;;  %v1199_v29 = vsub.f32 %v1195_v36, %v1198_v27 }
 0x444   : > { %v1200_v30 = vmul.f32 1.442695, %v1199_v29 }
 0x446   : > { %3203 = vpow2.f32 %v1200_v30  ;;  %v1587_v30 = vsel %vm1100_vm4, %v1582_v7, 0 }
 0x449   : > { %v1311_v31 = vpop.xlane.xlu0 %1310 }
 0x44a   : > { %v1312_v32 = vsub.f32 %v1308_v47, %v1311_v31 }
 0x44c   : > { %v3202_v34 = vpop.eup %3201  ;;  %v1313_v35 = vmul.f32 1.442695, %v1312_v32 }
 0x44d   : > { %v1090_v37 = vsel %vm1083_vm5, %v3202_v34, 0.0 }
 0x44e   : > { %3205 = vpow2.f32 %v1313_v35  ;;  %1091 = vadd.xlane.f32.xlu1 %v1090_v37 }
 0x450   : > { %v3204_v38 = vpop.eup %3203 }
 0x451   : > { %v1423_v39 = vpop.xlane.xlu0 %1422  ;;  %v1202_v42 = vsel %vm1083_vm5, %v3204_v38, 0.0 }
 0x452   : > { %v1424_v43 = vsub.f32 %v1420_v55, %v1423_v39  ;;  %1203 = vadd.xlane.f32.xlu0 %v1202_v42 }
 0x454   : > { %v1425_v28 = vmul.f32 1.442695, %v1424_v43 }
 0x456   : > { %3207 = vpow2.f32 %v1425_v28 }
 0x458   : > { %v3636_v44 = vpop.eup %3205 }
 0x459   : > { %v1315_v36 = vsel %vm1083_vm5, %v3636_v44, 0.0  ;;  %v1572_v50 = vpop.xlane.xlu1 %1571 }
 0x45a   : > { %1316 = vadd.xlane.f32.xlu1 %v1315_v36  ;;  %v1573_v51 = vsub.f32 %v3627_v0, %v1572_v50 }
 0x45c   : > { %v1574_v55 = vmul.f32 1.442695, %v1573_v51 }
 0x45e   : > { %3209 = vpow2.f32 %v1574_v55 }
 0x460   : > { %v3640_v47 = vpop.eup %3207 }
 0x461   : > { %v1427_v48 = vsel %vm1083_vm5, %v3640_v47, 0.0  ;;  %v1683_v52 = vpop.xlane.xlu0 %1682 }
 0x462   : > { %1428 = vadd.xlane.f32.xlu0 %v1427_v48  ;;  %v1684_v54 = vsub.f32 %v1680_v8, %v1683_v52 }
 0x464   : > { %v1685_v59 = vmul.f32 1.442695, %v1684_v54 }
 0x466   : > { %3211 = vpow2.f32 %v1685_v59 }
 0x468   : > { %v3651_v63 = vpop.eup %3209 }
 0x469   : > { %v1796_v53 = vpop.xlane.xlu1 %1795  ;;  %v1576_v0 = vsel %vm1083_vm5, %v3651_v63, 0.0 }
 0x46a   : > { %v1797_v56 = vsub.f32 %v1793_v15, %v1796_v53 }
 0x46b   : > { %1321 = vrot.lane.b32.xlu1 %v3575_v1, %s3306_s23 }
 0x46c   : > { %v1798_v60 = vmul.f32 1.442695, %v1797_v56 }
 0x46e   : > { %3213 = vpow2.f32 %v1798_v60 }
 0x46f   : > { %1433 = vrot.lane.b32.xlu1 %v3575_v1, %s3307_s5 }
 0x471   : > { %v1908_v58 = vpop.xlane.xlu0 %1907 }
 0x472   : > { %v1909_v61 = vsub.f32 %v1905_v22, %v1908_v58 }
 0x474   : > { %v1910_v62 = vmul.f32 1.442695, %v1909_v61 }
 0x476   : > { %3215 = vpow2.f32 %v1910_v62 }
 0x478   : > { %1209 = vrot.lane.b32.xlu0 %v3575_v1, %s3301_s24  ;;  %v3653_v1 = vpop.eup %3211 }
 0x479   : > { %v3657_v2 = vpop.eup %3213  ;;  %v1687_v4 = vsel %vm1083_vm5, %v3653_v1, 0.0 }
 0x47a   : > { %v1800_v3 = vsel %vm1083_vm5, %v3657_v2, 0.0 }
 0x480   : > { %v3663_v5 = vpop.eup %3215 }
 0x481   : > { %v1912_v6 = vsel %vm1083_vm5, %v3663_v5, 0.0 }
 0x493   : > { %1577 = vadd.xlane.f32.xlu1 %v1576_v0 }
 0x497   : > { %1801 = vadd.xlane.f32.xlu0 %v1800_v3  ;;  %1688 = vadd.xlane.f32.xlu1 %v1687_v4 }
 0x49b   : > { %1913 = vadd.xlane.f32.xlu1 %v1912_v6 }
 0x4ac   : > { %1806 = vrot.lane.b32.xlu1 %v1582_v7, %s3306_s23  ;;  %s3969_s23 = scalar_lea.vmem %s3921_s9, %s3445_s19 }
 0x4ad   : > { %1694 = vrot.lane.b32.xlu0 %v1582_v7, %s3301_s24 }
 0x4b1   : > { %1918 = vrot.lane.b32.xlu0 %v1582_v7, %s3307_s5  ;;  %s3309_s5 = smov 24  }
 0x4db   : > { %v1092_v8 = vpop.xlane.xlu1 %1091 }
 0x4dc   : > { %3217 = vrcp.f32 %v1092_v8 }
 0x4df   : > { %v1204_v9 = vpop.xlane.xlu0 %1203 }
 0x4e0   : > { %3219 = vrcp.f32 %v1204_v9 }
 0x4e6   : > { %v3218_v10 = vpop.eup %3217 }
 0x4e7   : > { %v3672_v11 = vmul.f32 %v3218_v10, %v3202_v34  ;;  %v1317_v13 = vpop.xlane.xlu1 %1316 }
 0x4e8   : > { %3221 = vrcp.f32 %v1317_v13 }
 0x4e9   : > { %v1095_v12 = vpack.c.bf16 %v3672_v11, %v3672_v11 }
 0x4ea   : > { %v3220_v57 = vpop.eup %3219 }
 0x4eb   : > { %2996 = vmatmul.mubr.msk.bf16.vlgmr.msra.gmra.mrb[8].mxu1 %vm1083_vm5, %v1095_v12  ;;  %v3679_v15 = vmul.f32 %v3220_v57, %v3204_v38  ;;  %v1322_v18 = vpop.permute.xlu1 %1321  ;;  %v3169_v12 = vld [vmem:[%s3467_s17] sm:$0xff]  }
 0x4ec   : > { %3007 = vmatprep.mubr.msk.bf16.mxu1 %vm3300_vm2, %v3299_v45  ;;  %v1327_v21 = vsel %vm1100_vm4, %v1322_v18, 0  ;;  %3084 = vmatpush3.bf16.msra.mxu0 %v3169_v12 }
 0x4ed   : > { %v1207_v19 = vpack.c.bf16 %v3679_v15, %v3679_v15  ;;  %3085 = vmatprep.subr.bf16.mxu0 %v3299_v45 }
 0x4ef   : > { %v1429_v14 = vpop.xlane.xlu0 %1428  ;;  %v1434_v23 = vpop.permute.xlu1 %1433 }
 0x4f0   : > { %3223 = vrcp.f32 %v1429_v14  ;;  %v1439_v26 = vsel %vm1100_vm4, %v1434_v23, 0 }
 0x4f2   : > { %v3222_v20 = vpop.eup %3221 }
 0x4f3   : > { %v1210_v16 = vpop.permute.xlu0 %1209  ;;  %v3690_v22 = vmul.f32 %v3222_v20, %v3636_v44  ;;  %v3171_v20 = vld [vmem:[%s3467_s17 + $0x10] sm:$0xff]  }
 0x4f4   : > { %v1215_v17 = vsel %vm1100_vm4, %v1210_v16, 0  ;;  %v3170_v16 = vld [vmem:[%s3467_s17 + $0x8] sm:$0xff]  }
 0x4f5   : > { %3006 = vmatpush3.bf16.msra.mxu1 %v1215_v17  ;;  %v1320_v24 = vpack.c.bf16 %v3690_v22, %v3690_v22  ;;  %3086 = vmatpush3.bf16.msra.mxu0 %v3170_v16 }
 0x4f6   : > { %3017 = vmatprep.subr.bf16.mxu1 %v3299_v45  ;;  %3087 = vmatprep.subr.bf16.mxu0 %v3299_v45 }
 0x4f8   : > { %3008 = vmatmul.mubr.msk.bf16.vlgmr.msra.gmra.mrb[12].mxu1 %vm1083_vm5, %v1207_v19 }
 0x4f9   : > { %3018 = vmatpush3.bf16.msra.mxu1 %v1327_v21  ;;  %3019 = vmatprep.mubr.msk.bf16.mxu1 %vm3300_vm2, %v3299_v45 }
 0x4fa   : > { %3029 = vmatprep.subr.bf16.mxu1 %v3299_v45  ;;  %v3224_v25 = vpop.eup %3223  ;;  %3088 = vmatpush3.bf16.msra.mxu0 %v3171_v20  ;;  %v3176_v20 = vld [vmem:[%s3480_s2 + $0x10] ss:$8 sps:$4 sm:$0xff]  }
 0x4fb   : > { %v3700_v27 = vmul.f32 %v3224_v25, %v3640_v47  ;;  %3089 = vmatprep.subr.bf16.mxu0 %v3299_v45 }
 0x4fd   : > { %v1432_v29 = vpack.c.bf16 %v3700_v27, %v3700_v27 }
 0x500   : > { %3020 = vmatmul.mubr.msk.bf16.vlgmr.msra.gmra.mrb[16].mxu1 %vm1083_vm5, %v1320_v24  ;;  %v3172_v24 = vld [vmem:[%s3467_s17 + $0x18] sm:$0xff]  }
 0x501   : > { %3030 = vmatpush3.bf16.msra.mxu1 %v1439_v26  ;;  %3031 = vmatprep.mubr.msk.bf16.mxu1 %vm3300_vm2, %v3299_v45 }
 0x502   : > { %3041 = vmatprep.subr.bf16.mxu1 %v3299_v45  ;;  %3090 = vmatpush3.bf16.msra.mxu0 %v3172_v24  ;;  %v3182_v24 = vld [vmem:[%s3480_s2 + $0x30] ss:$8 sps:$4 sm:$0xff]  }
 0x508   : > { %3032 = vmatmul.mubr.msk.bf16.vlgmr.msra.gmra.mrb[20].mxu1 %vm1083_vm5, %v1432_v29 }
 0x509   : > { %3042 = vmatpush3.bf16.msra.mxu1 %v1587_v30  ;;  %3043 = vmatprep.mubr.msk.bf16.mxu1 %vm3300_vm2, %v3299_v45 }
 0x50a   : > { %3053 = vmatprep.subr.bf16.mxu1 %v3299_v45 }
 0x520   : > { %v1578_v31 = vpop.xlane.xlu1 %1577 }
 0x521   : > { %3225 = vrcp.f32 %v1578_v31 }
 0x524   : > { %v1689_v32 = vpop.xlane.xlu1 %1688  ;;  %v1802_v34 = vpop.xlane.xlu0 %1801 }
 0x525   : > { %3227 = vrcp.f32 %v1689_v32 }
 0x526   : > { %3229 = vrcp.f32 %v1802_v34 }
 0x528   : > { %v1695_v38 = vpop.permute.xlu0 %1694  ;;  %v1914_v43 = vpop.xlane.xlu1 %1913 }
 0x529   : > { %v1700_v28 = vsel %vm1100_vm4, %v1695_v38, 0  ;;  %3231 = vrcp.f32 %v1914_v43 }
 0x52b   : > { %v3226_v35 = vpop.eup %3225 }
 0x52c   : > { %v3711_v37 = vmul.f32 %v3226_v35, %v3651_v63  ;;  %v1807_v36 = vpop.permute.xlu1 %1806  ;;  %v1919_v52 = vpop.permute.xlu0 %1918 }
 0x52d   : > { %v1812_v50 = vsel %vm1100_vm4, %v1807_v36, 0  ;;  %v1924_v55 = vsel %vm1100_vm4, %v1919_v52, 0 }
 0x52e   : > { %v1581_v39 = vpack.c.bf16 %v3711_v37, %v3711_v37 }
 0x52f   : > { %v3228_v42 = vpop.eup %3227 }
 0x530   : > { %3044 = vmatmul.mubr.msk.bf16.vlgmr.msra.gmra.mrb[24].mxu1 %vm1083_vm5, %v1581_v39  ;;  %v3720_v44 = vmul.f32 %v3228_v42, %v3653_v1  ;;  %v3230_v48 = vpop.eup %3229 }
 0x531   : > { %3054 = vmatpush3.bf16.msra.mxu1 %v1700_v28  ;;  %3055 = vmatprep.mubr.msk.bf16.mxu1 %vm3300_vm2, %v3299_v45  ;;  %v3730_v51 = vmul.f32 %v3230_v48, %v3657_v2 }
 0x532   : > { %3065 = vmatprep.subr.bf16.mxu1 %v3299_v45  ;;  %v1692_v47 = vpack.c.bf16 %v3720_v44, %v3720_v44 }
 0x533   : > { %v1805_v53 = vpack.c.bf16 %v3730_v51, %v3730_v51  ;;  %v3232_v54 = vpop.eup %3231 }
 0x534   : > { %v3740_v56 = vmul.f32 %v3232_v54, %v3663_v5 }
 0x536   : > { %v1917_v58 = vpack.c.bf16 %v3740_v56, %v3740_v56 }
 0x538   : > { %3056 = vmatmul.mubr.msk.bf16.vlgmr.msra.gmra.mrb[28].mxu1 %vm1083_vm5, %v1692_v47 }
 0x539   : > { %3066 = vmatpush3.bf16.msra.mxu1 %v1812_v50  ;;  %3067 = vmatprep.mubr.msk.bf16.mxu1 %vm3300_vm2, %v3299_v45 }
 0x53a   : > { %3077 = vmatprep.subr.bf16.mxu1 %v3299_v45 }
 0x540   : > { %3068 = vmatmul.mubr.msk.bf16.vlgmr.msra.gmra.mrb[32].mxu1 %vm1083_vm5, %v1805_v53 }
 0x541   : > { %3078 = vmatpush3.bf16.msra.mxu1 %v1924_v55  ;;  %3079 = vmatprep.mubr.msk.bf16.mxu1 %vm3300_vm2, %v3299_v45 }
 0x548   : > { %3080 = vmatmul.mubr.msk.bf16.vlgmr.msra.gmra.mrb[36].mxu1 %vm1083_vm5, %v1917_v58 }
 0x549   : > { %2225 = vmatprep.mubr.bf16.mxu1 %v3298_v33 }
 0x5be   : > { %v1138_v59 = vpop.f32.mrb[8].mxu1 }
 0x5bf   : > { %v2997_v60 = vpop.f32.mrb[9].mxu1 }
 0x5c0   : > { %v1141_v61 = vpop.f32.mrb[10].mxu1 }
 0x5c1   : > { %v2998_v62 = vpop.f32.mrb[11].mxu1 }
 0x5cb   : > { %v1251_v63 = vpop.f32.mrb[12].mxu1 }
 0x5cc   : > { %v3009_v1 = vpop.f32.mrb[13].mxu1 }
 0x5cd   : > { %v1254_v0 = vpop.f32.mrb[14].mxu1 }
 0x5ce   : > { %v3010_v2 = vpop.f32.mrb[15].mxu1 }
 0x5d3   : > { %v1363_v3 = vpop.f32.mrb[16].mxu1 }
 0x5d4   : > { %v3021_v4 = vpop.f32.mrb[17].mxu1 }
 0x5d5   : > { %v1366_v5 = vpop.f32.mrb[18].mxu1 }
 0x5d6   : > { %v3022_v6 = vpop.f32.mrb[19].mxu1 }
 0x5db   : > { %v1475_v7 = vpop.f32.mrb[20].mxu1 }
 0x5dc   : > { %v3033_v8 = vpop.f32.mrb[21].mxu1 }
 0x5dd   : > { %v1478_v9 = vpop.f32.mrb[22].mxu1 }
 0x5de   : > { %v3034_v10 = vpop.f32.mrb[23].mxu1 }
 0x603   : > { %v1623_v33 = vpop.f32.mrb[24].mxu1 }
 0x604   : > { %v3045_v13 = vpop.f32.mrb[25].mxu1 }
 0x605   : > { %v1626_v57 = vpop.f32.mrb[26].mxu1 }
 0x606   : > { %v3046_v14 = vpop.f32.mrb[27].mxu1 }
 0x60b   : > { %v1736_v17 = vpop.f32.mrb[28].mxu1 }
 0x60c   : > { %v3142_v18 = vpack.i.bf16 %v1736_v17, %v1251_v63  ;;  %v3057_v19 = vpop.f32.mrb[29].mxu1  ;;  %v2869_v63 = vld [vmem:[%s3967_s18] ss:$0 sm:$0xff]  ;;  %v3175_v17 = vld [vmem:[%s3480_s2 + $0x4] ss:$8 sps:$4 sm:$0xff]  }
 0x60d   : > { %v1739_v21 = vpop.f32.mrb[30].mxu1  ;;  %2193 = vmatprep.subr.bf16.mxu1 %v3175_v17  ;;  %v3178_v19 = vld [vmem:[%s3480_s2 + $0x14] ss:$8 sps:$4 sm:$0xff]  }
 0x60e   : > { %3143 = vrot.lane.b32.xlu0 %v3142_v18, %s3305_s27  ;;  %v3058_v23 = vpop.f32.mrb[31].mxu1  ;;  %v3173_v18 = vld [vmem:[%s3480_s2] ss:$8 sps:$4 sm:$0xff]   ;;  %v3181_v21 = vld [vmem:[%s3480_s2 + $0x24] ss:$8 sps:$4 sm:$0xff]  }
 0x60f   : > { %2194 = vmatpush1.bf16.msra.mxu1 %v3173_v18  ;;  %v3179_v23 = vld [vmem:[%s3480_s2 + $0x20] ss:$8 sps:$4 sm:$0xff]  }
 0x610   : > { %2195 = vmatprep.subr.bf16.mxu1 %v3178_v19 }
 0x613   : > { %v1848_v25 = vpop.f32.mrb[32].mxu1  ;;  %2196 = vmatpush1.bf16.msra.mxu1 %v3176_v20 }
 0x614   : > { %v3147_v26 = vpack.i.bf16 %v1848_v25, %v1363_v3  ;;  %v3069_v29 = vpop.f32.mrb[33].mxu1  ;;  %2197 = vmatprep.subr.bf16.mxu1 %v3181_v21  ;;  %v3184_v25 = vld [vmem:[%s3480_s2 + $0x34] ss:$8 sps:$4 sm:$0xff]  }
 0x615   : > { %v1851_v30 = vpop.f32.mrb[34].mxu1 }
 0x616   : > { %3148 = vrot.lane.b32.xlu1 %v3147_v26, %s3303_s22  ;;  %v3070_v31 = vpop.f32.mrb[35].mxu1  ;;  %s3968_s22 = scalar_lea.vmem %s3920_s8, %s3445_s19 }
 0x617   : > { %2198 = vmatpush1.bf16.msra.mxu1 %v3179_v23 }
 0x618   : > { %2199 = vmatprep.subr.bf16.mxu1 %v3184_v25 }
 0x61b   : > { %v1960_v32 = vpop.f32.mrb[36].mxu1  ;;  %2200 = vmatpush1.bf16.msra.mxu1 %v3182_v24 }
 0x61c   : > { %v3152_v34 = vpack.i.bf16 %v1960_v32, %v1475_v7  ;;  %v3081_v35 = vpop.f32.mrb[37].mxu1 }
 0x61d   : > { %v1963_v38 = vpop.f32.mrb[38].mxu1 }
 0x61e   : > { %3153 = vrot.lane.b32.xlu0 %v3152_v34, %s3304_s6  ;;  %v3082_v39 = vpop.f32.mrb[39].mxu1  ;;  %v2875_v38 = vld [vmem:[%s3968_s22] ss:$0 sm:$0xff] }
 0x680   : > { %v3144_v42 = vpop.permute.xlu0 %3143 }
 0x681   : > { %v3146_v28 = vunpack.i.h.bf16 %v3144_v42  ;;  %v3145_v45 = vunpack.i.l.bf16 %v3144_v42 }
 0x683   : > { %v1978_v50 = vsel %vm1030_vm3, %v1623_v33, %v3146_v28  ;;  %v1493_v52 = vsel %vm1030_vm3, %v1138_v59, %v3145_v45  ;;  %v2876_v45 = vld [vmem:[%s3969_s23] ss:$0 sm:$0xff] }
 0x688   : > { %v3149_v43 = vpop.permute.xlu1 %3148 }
 0x689   : > { %v3151_v36 = vunpack.i.h.bf16 %v3149_v43  ;;  %v3150_v47 = vunpack.i.l.bf16 %v3149_v43 }
 0x68b   : > { %v1495_v55 = vsel %vm1494_vm6, %v1493_v52, %v3150_v47  ;;  %v1979_v58 = vsel %vm1494_vm6, %v1978_v50, %v3151_v36  ;;  %v3185_v52 = vld [vmem:[%s3491_s16 + $0x40] sm:$0xff]  }
 0x68c   : > { %2960 = vmatprep.subr.bf16.mxu0 %v3185_v52 }
 0x690   : > { %v3154_v48 = vpop.permute.xlu0 %3153 }
 0x691   : > { %v3156_v53 = vunpack.i.h.bf16 %v3154_v48  ;;  %v3155_v54 = vunpack.i.l.bf16 %v3154_v48 }
 0x693   : > { %v1497_v60 = vsel %vm1496_vm7, %v1495_v55, %v3155_v54  ;;  %v1980_v61 = vsel %vm1496_vm7, %v1979_v58, %v3156_v53  ;;  %v3186_v53 = vld [vmem:[%s3491_s16] sm:$0xff]   ;;  %v3187_v54 = vld [vmem:[%s3491_s16 + $0x48] sm:$0xff]   ;;  %v3189_v58 = vld [vmem:[%s3491_s16 + $0x50] sm:$0xff]  }
 0x694   : > { %v1998_v62 = vpack.c.bf16 %v1980_v61, %v1497_v60  ;;  %v3188_v55 = vld [vmem:[%s3491_s16 + $0x8] sm:$0xff]   ;;  %v3190_v60 = vld [vmem:[%s3491_s16 + $0x10] sm:$0xff]   ;;  %v3191_v61 = vld [vmem:[%s3491_s16 + $0x58] sm:$0xff]  }
 0x696   : > { %3092 = vmatmul.mubr.msk.bf16.vlgmr.msra.gmra.mrb[28].mxu0 %vm978_vm1, %v1998_v62  ;;  %v3192_v62 = vld [vmem:[%s3491_s16 + $0x18] sm:$0xff]  }
 0x697   : > { %2961 = vmatpush3.bf16.msra.mxu0 %v3186_v53 }
 0x698   : > { %2962 = vmatprep.subr.bf16.mxu0 %v3187_v54 }
 0x69b   : > { %2963 = vmatpush3.bf16.msra.mxu0 %v3188_v55 }
 0x69c   : > { %2964 = vmatprep.subr.bf16.mxu0 %v3189_v58 }
 0x69f   : > { %2965 = vmatpush3.bf16.msra.mxu0 %v3190_v60 }
 0x6a0   : > { %2966 = vmatprep.subr.bf16.mxu0 %v3191_v61 }
 0x6a3   : > { %2967 = vmatpush3.bf16.msra.mxu0 %v3192_v62 }
 0x769   : > { %v2075_v1 = vpop.f32.mrb[28].mxu0 }
 0x76a   : > { %v2076_v0 = vadd.f32 %v2869_v63, %v2075_v1  ;;  %v3093_v2 = vpop.f32.mrb[29].mxu0  ;;  %v3194_v1 = vld [vmem:[%s3491_s16 + $0x20] sm:$0xff]  }
 0x76b   : > { %v2078_v59 = vpop.f32.mrb[30].mxu0  ;;  %v3196_v2 = vld [vmem:[%s3491_s16 + $0x28] sm:$0xff]  }
 0x76c   : > { %v2079_v3 = vadd.f32 %v2869_v63, %v2078_v59  ;;  %v3094_v4 = vpop.f32.mrb[31].mxu0  ;;  %v2082_v5 = vadd.f32 %v2076_v0, %v3539_v40  ;;  %v3193_v63 = vld [vmem:[%s3491_s16 + $0x60] sm:$0xff]   ;;  %v3195_v0 = vld [vmem:[%s3491_s16 + $0x68] sm:$0xff]   ;;  %v3197_v59 = vld [vmem:[%s3491_s16 + $0x70] sm:$0xff]  }
 0x76d   : > { %2968 = vmatprep.subr.bf16.mxu0 %v3193_v63  ;;  %v3199_v4 = vld [vmem:[%s3491_s16 + $0x78] sm:$0xff]  }
 0x76e   : > { %v2086_v6 = vsel %vm978_vm1, %v2082_v5, 0.0  ;;  %v2083_v7 = vadd.f32 %v2079_v3, %v3541_v41  ;;  %2969 = vmatpush3.bf16.msra.mxu0 %v3194_v1  ;;  %v3198_v3 = vld [vmem:[%s3491_s16 + $0x30] sm:$0xff]  }
 0x76f   : > { %2087 = vadd.xlane.f32.xlu1 %v2086_v6  ;;  %2970 = vmatprep.subr.bf16.mxu0 %v3195_v0  ;;  %v2138_v6 = vld [vmem:[%s3485_s29] sm:$0x3] }
 0x770   : > { %v2089_v8 = vsel %vm978_vm1, %v2083_v7, 0.0 }
 0x771   : > { %2090 = vadd.xlane.f32.xlu0 %v2089_v8  ;;  %v2147_v8 = vrot.slane %v2138_v6, %v3552_v49 }
 0x772   : > { %2971 = vmatpush3.bf16.msra.mxu0 %v3196_v2 }
 0x773   : > { %2972 = vmatprep.subr.bf16.mxu0 %v3197_v59  ;;  %v2886_v59 = vld [vmem:[%s848_s1] ss:$0 sm:$0xff]  ;;  %s3308_s1 = smov 8  }
 0x776   : > { %2973 = vmatpush3.bf16.msra.mxu0 %v3198_v3 }
 0x777   : > { %2974 = vmatprep.subr.bf16.mxu0 %v3199_v4 }
 0x7fc   : > { %v2088_v9 = vpop.xlane.xlu1 %2087 }
 0x7fd   : > { %v2093_v10 = vmul.f32 0.015625, %v2088_v9 }
 0x7fe   : > { %v2091_v33 = vpop.xlane.xlu0 %2090 }
 0x7ff   : > { %v2095_v12 = vsub.f32 %v2082_v5, %v2093_v10  ;;  %v2094_v13 = vmul.f32 0.015625, %v2091_v33  ;;  %v3200_v5 = vld [vmem:[%s3491_s16 + $0x38] sm:$0xff]  }
 0x800   : > { %2975 = vmatpush3.bf16.msra.mxu0 %v3200_v5 }
 0x801   : > { %v2096_v57 = vsub.f32 %v2083_v7, %v2094_v13  ;;  %v2097_v40 = vmul.f32 %v2095_v12, %v2095_v12  ;;  %v2143_v7 = vrot.slane %v2138_v6, %v3548_v46 }
 0x803   : > { %v2099_v14 = vsel %vm978_vm1, %v2097_v40, 0.0  ;;  %v2098_v41 = vmul.f32 %v2096_v57, %v2096_v57 }
 0x804   : > { %2100 = vadd.xlane.f32.xlu0 %v2099_v14 }
 0x805   : > { %v2102_v16 = vsel %vm978_vm1, %v2098_v41, 0.0 }
 0x806   : > { %2103 = vadd.xlane.f32.xlu1 %v2102_v16 }
 0x891   : > { %v2101_v26 = vpop.xlane.xlu0 %2100 }
 0x892   : > { %v2105_v29 = vmul.f32 0.015625, %v2101_v26 }
 0x893   : > { %v2104_v30 = vpop.xlane.xlu1 %2103 }
 0x894   : > { %v2107_v31 = vadd.f32 1e-12, %v2105_v29  ;;  %v2106_v32 = vmul.f32 0.015625, %v2104_v30 }
 0x896   : > { %3233 = vrsqrt.f32 %v2107_v31  ;;  %v2108_v34 = vadd.f32 1e-12, %v2106_v32 }
 0x898   : > { %3235 = vrsqrt.f32 %v2108_v34 }
 0x8a0   : > { %v3234_v35 = vpop.eup %3233 }
 0x8a1   : > { %v2111_v39 = vmul.f32 %v3234_v35, %v2095_v12 }
 0x8a2   : > { %v3236_v42 = vpop.eup %3235 }
 0x8a3   : > { %v2119_v43 = vmul.f32 %v2875_v38, %v2111_v39  ;;  %v2112_v28 = vmul.f32 %v3236_v42, %v2096_v57 }
 0x8a5   : > { %v2120_v36 = vmul.f32 %v2875_v38, %v2112_v28  ;;  %v3790_v47 = vadd.f32 %v2876_v45, %v2119_v43 }
 0x8a7   : > { %v3792_v48 = vadd.f32 %v2876_v45, %v2120_v36 }
 0x8a9   : > { %v2129_v50 = vpack.c.bf16 %v3792_v48, %v3790_v47 }
 0x8ab   : > { %2885 = vmatmul.mubr.msk.bf16.vlgmr.msra.gmra.mrb[40].mxu1 %vm978_vm1, %v2129_v50 }
 0x97e   : > { %v2227_v9 = vpop.f32.mrb[40].mxu1 }
 0x97f   : > { %v2228_v10 = vadd.f32 %v2227_v9, %v2143_v7  ;;  %v2229_v33 = vpop.f32.mrb[41].mxu1 }
 0x980   : > { %v2230_v12 = vadd.f32 %v2229_v33, %v2147_v8  ;;  %v2231_v13 = vpop.f32.mrb[42].mxu1 }
 0x981   : > { %v2240_v57 = vmul.f32 0.044715, %v2228_v10  ;;  %v2232_v40 = vadd.f32 %v2231_v13, %v2143_v7  ;;  %v2233_v14 = vpop.f32.mrb[43].mxu1  ;;  %v2236_v50 = vmul.f32 0.5, %v2228_v10 }
 0x982   : > { %v2241_v41 = vmul.f32 0.044715, %v2230_v12  ;;  %v2234_v16 = vadd.f32 %v2233_v14, %v2147_v8  ;;  %v2237_v54 = vmul.f32 0.5, %v2230_v12 }
 0x983   : > { %v2244_v17 = vmul.f32 %v2240_v57, %v2228_v10  ;;  %v2242_v18 = vmul.f32 0.044715, %v2232_v40  ;;  %v2238_v52 = vmul.f32 0.5, %v2232_v40 }
 0x984   : > { %v2245_v19 = vmul.f32 %v2241_v41, %v2230_v12  ;;  %v2243_v20 = vmul.f32 0.044715, %v2234_v16  ;;  %v2239_v55 = vmul.f32 0.5, %v2234_v16 }
 0x985   : > { %v2248_v21 = vmul.f32 %v2244_v17, %v2228_v10  ;;  %v2246_v23 = vmul.f32 %v2242_v18, %v2232_v40 }
 0x986   : > { %v2249_v24 = vmul.f32 %v2245_v19, %v2230_v12  ;;  %v2247_v46 = vmul.f32 %v2243_v20, %v2234_v16 }
 0x987   : > { %v2252_v25 = vadd.f32 %v2248_v21, %v2228_v10  ;;  %v2250_v49 = vmul.f32 %v2246_v23, %v2232_v40 }
 0x988   : > { %v2251_v26 = vmul.f32 %v2247_v46, %v2234_v16  ;;  %v2253_v29 = vadd.f32 %v2249_v24, %v2230_v12 }
 0x989   : > { %v2256_v30 = vmul.f32 0.7978846, %v2252_v25  ;;  %v2254_v31 = vadd.f32 %v2250_v49, %v2232_v40 }
 0x98a   : > { %v2255_v32 = vadd.f32 %v2251_v26, %v2234_v16  ;;  %v2257_v34 = vmul.f32 0.7978846, %v2253_v29 }
 0x98b   : > { %3237 = vtanh.f32 %v2256_v30  ;;  %v2258_v35 = vmul.f32 0.7978846, %v2254_v31 }
 0x98c   : > { %v2259_v38 = vmul.f32 0.7978846, %v2255_v32  ;;  %3239 = vtanh.f32 %v2257_v34  ;;  %v2903_v34 = vld [vmem:[%s851_s4] ss:$0 sm:$0xff] }
 0x98d   : > { %3241 = vtanh.f32 %v2258_v35 }
 0x98e   : > { %3243 = vtanh.f32 %v2259_v38 }
 0x995   : > { %v3238_v39 = vpop.eup %3237 }
 0x996   : > { %v3240_v42 = vpop.eup %3239  ;;  %v2264_v43 = vadd.f32 1.0, %v3238_v39 }
 0x997   : > { %v3242_v28 = vpop.eup %3241  ;;  %v2265_v45 = vadd.f32 1.0, %v3240_v42 }
 0x998   : > { %v3244_v36 = vpop.eup %3243  ;;  %v2266_v53 = vadd.f32 1.0, %v3242_v28  ;;  %v2268_v60 = vmul.f32 %v2264_v43, %v2236_v50 }
 0x999   : > { %v2267_v58 = vadd.f32 1.0, %v3244_v36  ;;  %v2269_v62 = vmul.f32 %v2265_v45, %v2237_v54 }
 0x99a   : > { %v2270_v61 = vmul.f32 %v2266_v53, %v2238_v52 }
 0x99b   : > { %v2271_v63 = vmul.f32 %v2267_v58, %v2239_v55 }
 0x99c   : > { %v2272_v1 = vpack.c.bf16 %v2270_v61, %v2268_v60 }
 0x99d   : > { %v2273_v0 = vpack.c.bf16 %v2271_v63, %v2269_v62 }
 0x99f   : > { %2441 = vmatprep.mubr.bf16.mxu0 %v2273_v0 }
 0x9a0   : > { %2442 = vmatmul.mubr.bf16.vlgmr.msra.gmra.mrb[32].mxu0 %v2272_v1 }
 0xa73   : > { %v2976_v2 = vpop.f32.mrb[32].mxu0 }
 0xa74   : > { %v2977_v3 = vpop.f32.mrb[33].mxu0 }
 0xa75   : > { %v2978_v4 = vadd.f32 %v2977_v3, %v2976_v2  ;;  %v2979_v5 = vpop.f32.mrb[34].mxu0 }
 0xa76   : > { %v2980_v6 = vpop.f32.mrb[35].mxu0 }
 0xa77   : > { %v2444_v7 = vadd.f32 %v2978_v4, %v2886_v59  ;;  %v2981_v8 = vadd.f32 %v2980_v6, %v2979_v5 }
 0xa79   : > { %v2447_v9 = vadd.f32 %v2981_v8, %v2886_v59  ;;  %v2450_v10 = vadd.f32 %v2444_v7, %v3790_v47 }
 0xa7b   : > { %v2454_v33 = vsel %vm978_vm1, %v2450_v10, 0.0  ;;  %v2451_v12 = vadd.f32 %v2447_v9, %v3792_v48 }
 0xa7c   : > { %2455 = vadd.xlane.f32.xlu0 %v2454_v33 }
 0xa7d   : > { %v2457_v13 = vsel %vm978_vm1, %v2451_v12, 0.0 }
 0xa7e   : > { %2458 = vadd.xlane.f32.xlu1 %v2457_v13 }
 0xa8f   : > { %1503 = vrot.lane.b32.xlu1 %v3690_v22, %s3305_s27 }
 0xa92   : > { %1499 = vrot.lane.b32.xlu0 %v3679_v15, %s3308_s1 }
 0xa93   : > { %1507 = vrot.lane.b32.xlu1 %v3700_v27, %s3309_s5 }
 0xb09   : > { %v2456_v57 = vpop.xlane.xlu0 %2455 }
 0xb0a   : > { %v2460_v47 = vmul.f32 0.015625, %v2456_v57 }
 0xb0b   : > { %v2459_v40 = vpop.xlane.xlu1 %2458 }
 0xb0c   : > { %v2462_v14 = vsub.f32 %v2450_v10, %v2460_v47  ;;  %v2461_v48 = vmul.f32 0.015625, %v2459_v40 }
 0xb0d   : > { %v1500_v41 = vpop.permute.xlu0 %1499 }
 0xb0e   : > { %v2463_v16 = vsub.f32 %v2451_v12, %v2461_v48  ;;  %v2464_v17 = vmul.f32 %v2462_v14, %v2462_v14  ;;  %v1510_v22 = vsel %vm1083_vm5, %v3672_v11, %v1500_v41 }
 0xb0f   : > { %v1504_v18 = vpop.permute.xlu1 %1503 }
 0xb10   : > { %v2466_v19 = vsel %vm978_vm1, %v2464_v17, 0.0  ;;  %v2465_v20 = vmul.f32 %v2463_v16, %v2463_v16  ;;  %v1511_v27 = vsel %vm1030_vm3, %v1510_v22, %v1504_v18 }
 0xb11   : > { %2467 = vadd.xlane.f32.xlu0 %v2466_v19 }
 0xb12   : > { %v2469_v15 = vsel %vm978_vm1, %v2465_v20, 0.0 }
 0xb13   : > { %2470 = vadd.xlane.f32.xlu1 %v2469_v15  ;;  %v1508_v21 = vpop.permute.xlu1 %1507 }
 0xb14   : > { %v1513_v23 = vsel %vm1512_vm8, %v1511_v27, %v1508_v21 }
 0xb15   : > { %1996 = vst.msk [vmem:[%s3509_s10] sm:$0xff] %vm1494_vm6, %v1513_v23 }
 0xb24   : > { %1986 = vrot.lane.b32.xlu1 %v3730_v51, %s3305_s27 }
 0xb27   : > { %1982 = vrot.lane.b32.xlu0 %v3720_v44, %s3308_s1 }
 0xb2b   : > { %1990 = vrot.lane.b32.xlu0 %v3740_v56, %s3309_s5 }
 0xb9e   : > { %v2468_v11 = vpop.xlane.xlu0 %2467 }
 0xb9f   : > { %v2472_v24 = vmul.f32 0.015625, %v2468_v11 }
 0xba0   : > { %v2471_v46 = vpop.xlane.xlu1 %2470 }
 0xba1   : > { %v2474_v25 = vadd.f32 1e-12, %v2472_v24  ;;  %v2473_v49 = vmul.f32 0.015625, %v2471_v46 }
 0xba2   : > { %v1983_v26 = vpop.permute.xlu0 %1982 }
 0xba3   : > { %3245 = vrsqrt.f32 %v2474_v25  ;;  %v2475_v29 = vadd.f32 1e-12, %v2473_v49  ;;  %v1993_v30 = vsel %vm1083_vm5, %v3711_v37, %v1983_v26  ;;  %v2904_v37 = vld [vmem:[%s854_s3] ss:$0 sm:$0xff] }
 0xba4   : > { %v1987_v51 = vpop.permute.xlu1 %1986 }
 0xba5   : > { %3247 = vrsqrt.f32 %v2475_v29  ;;  %v1994_v44 = vsel %vm1030_vm3, %v1993_v30, %v1987_v51 }
 0xba6   : > { %v1991_v31 = vpop.permute.xlu0 %1990 }
 0xba7   : > { %v1995_v56 = vsel %vm1512_vm8, %v1994_v44, %v1991_v31 }
 0xba8   : > { %1997 = vst.msk [vmem:[%s3509_s10 + $0x8] sm:$0xff] %vm1494_vm6, %v1995_v56  ;;  %s3970_s10 = sld [smem:[#allocation7_spill]] }
 0xbad   : > { %v3246_v32 = vpop.eup %3245 }
 0xbae   : > { %v2478_v35 = vmul.f32 %v3246_v32, %v2462_v14  ;;  %p2905_p5 = scmp.ne.s32.totalorder %s3970_s10, 1 }
 0xbaf   : > { %v3248_v38 = vpop.eup %3247  ;;  %s3971_s28 = sld [smem:[#allocation17_spill]] (!%p2905_p5)  ;;  %v3310_v50 = vmov (!%p2905_p5), 0.0   ;;  %vm3311_vm9 = vmmov (!%p2905_p5), 0   ;;  %vm2505_vm10 = vcmask (!%p2905_p5), 1040384   ;;  %s3972_s23 = sld [smem:[#allocation18_spill]] (!%p2905_p5)  ;;  %vm2599_vm11 = vcmask (!%p2905_p5), 517120  }
 0xbb0   : > { %v2486_v39 = vmul.f32 %v2903_v34, %v2478_v35  ;;  %v2479_v42 = vmul.f32 %v3248_v38, %v2463_v16  ;;  %2501 = sbr.rel (%p2905_p5) target bundleno = 3543 (0xdd7), region = 108  ;;  %3095 = vmatprep.subr.bf16.mxu0 (!%p2905_p5), %v3310_v50  ;;  %3103 = vmatprep.mubr.msk.bf16.mxu0 (!%p2905_p5), %vm3311_vm9, %v3310_v50  ;;  %s3973_s5 = sld [smem:[#allocation19_spill]] (!%p2905_p5)  ;;  %v3312_v6 = vmov (!%p2905_p5), 0   ;;  %v2913_v7 = vld [vmem:[#allocation2] ss:$0 sm:$0xff] (!%p2905_p5) }
 0xbb1   : > { %3249 = vset.pattern.permute.xlu0 (!%p2905_p5), %v3312_v6  ;;  %s3974_s26 = sld [smem:[#allocation21_spill]] (!%p2905_p5) }
 0xbb2   : > { %v2494_v43 = vadd.f32 %v2904_v37, %v2486_v39  ;;  %v2487_v28 = vmul.f32 %v2903_v34, %v2479_v42 }
 0xbb4   : > { %2496 = vst.msk [vmem:[#allocation3] sm:$0xff] %vm978_vm1, %v2494_v43  ;;  %v2495_v45 = vadd.f32 %v2904_v37, %v2487_v28 }
 0xbb5   : > { %v3250_v36 = vld [vmem:[%s3971_s28] sm:$0xff] (!%p2905_p5)   ;;  %v3251_v52 = vld [vmem:[%s3971_s28 + $0x8] sm:$0xff] (!%p2905_p5)   ;;  %v3252_v53 = vld [vmem:[%s3971_s28 + $0x10] sm:$0xff] (!%p2905_p5)  }
 0xbb6   : > { %2497 = vst.msk [vmem:[#allocation3 + $0x8] sm:$0xff] %vm978_vm1, %v2495_v45  ;;  %3096 = vmatpush3.bf16.msra.mxu0 (!%p2905_p5), %v3250_v36  ;;  %v2503_v54 = vrot.slane (!%p2905_p5), %v2495_v45, 7  ;;  %v3253_v55 = vld [vmem:[%s3971_s28 + $0x18] sm:$0xff] (!%p2905_p5)   ;;  %v2906_v61 = vld [vmem:[%s3972_s23] ss:$0 sm:$0xff] (!%p2905_p5) }
 0xbb7   : > { %3097 = vmatprep.subr.bf16.mxu0 %v3310_v50  ;;  %v2912_v59 = vld [vmem:[%s3973_s5] ss:$0 sm:$0xff] }
 0xbb8   : > { %v2506_v58 = vsel %vm2505_vm10, %v2494_v43, %v2503_v54 }
 0xbb9   : > { %v2507_v60 = vpack.c.bf16 %v2506_v58, %v2506_v58 }
 0xbba   : > { %3098 = vmatpush3.bf16.msra.mxu0 %v3251_v52 }
 0xbbb   : > { %3099 = vmatprep.subr.bf16.mxu0 %v3310_v50 }
 0xbbe   : > { %3100 = vmatpush3.bf16.msra.mxu0 %v3252_v53 }
 0xbbf   : > { %3101 = vmatprep.subr.bf16.mxu0 %v3310_v50 }
 0xbc2   : > { %3102 = vmatpush3.bf16.msra.mxu0 %v3253_v55 }
 0xbc5   : > { %3104 = vmatmul.mubr.msk.bf16.vlgmr.msra.gmra.mrb[0].mxu0 %vm978_vm1, %v2507_v60 }
 0xc98   : > { %v2584_v62 = vpop.f32.mrb[0].mxu0 }
 0xc99   : > { %v2585_v63 = vadd.f32 %v2906_v61, %v2584_v62  ;;  %v3105_v1 = vpop.f32.mrb[1].mxu0 }
 0xc9a   : > { %v2587_v0 = vpop.f32.mrb[2].mxu0 }
 0xc9b   : > { %3254 = vtanh.f32 %v2585_v63  ;;  %v3106_v2 = vpop.f32.mrb[3].mxu0 }
 0xca5   : > { %v3255_v3 = vpop.eup %3254 }
 0xca6   : > { %v2598_v4 = vmul.f32 %v3255_v3, %v2912_v59 }
 0xca8   : > { %v2600_v5 = vsel %vm2599_vm11, %v2598_v4, 0.0 }
 0xca9   : > { %2601 = vadd.xlane.f32.xlu0 %v2600_v5 }
 0xd36   : > { %v2602_v8 = vpop.xlane.xlu0 %2601 }
 0xd37   : > { %v2610_v9 = vadd.f32 %v2913_v7, %v2602_v8 }
 0xd39   : > { %v2611_v10 = vsub.f32 0.0, %v2610_v9 }
 0xd3b   : > { %v2612_v33 = vmul.f32 1.442695, %v2611_v10 }
 0xd3d   : > { %3256 = vpow2.f32 %v2612_v33 }
 0xd47   : > { %v3257_v12 = vpop.eup %3256 }
 0xd48   : > { %v2614_v13 = vadd.f32 1.0, %v3257_v12 }
 0xd4a   : > { %3258 = vrcp.f32 %v2614_v13 }
 0xd54   : > { %v3259_v57 = vpop.eup %3258 }
 0xd55   : > { %2618 = vperm.xlu0 %3249, %v3259_v57  }
 0xdd4   : > { %v2619_v47 = vpop.permute.xlu0 %2618 }
 0xdd5   : > { %v2621_v40 = vsel %vm978_vm1, %v3255_v3, %v2619_v47 }
 0xdd6   : > { %2622 = vst [vmem:[%s3974_s26] sm:$0x3] %v2621_v40 }
 0xdd7 PF: > { %s3975_s0 = sld [smem:[#allocation7_spill]]  ;;  %s3313_s10 = smov [#allocation3]  }
 0xdd8   : > { %s2634_s4 = sshll.u32 %s3313_s10, 4  ;;  %s2635_s4 = int_to_ptr.vmem [resolvable:$true] %s2634_s4 }
 0xdd9   : > { %s3260_s17 = scalar_lea.vmem %s2635_s4, 256  ;;  %p3267_p10 = scmp.lt.s32.totalorder %s2635_s4, %s2635_s4 }
 0xdda   : > { %p3261_p7 = scmp.ne.s32.totalorder %s2635_s4, %s3260_s17  ;;  %p3268_p11 = scmp.lt.s32.totalorder %s3260_s17, %s3260_s17 }
 0xddc   : > { %p3269_p12 = por %p3268_p11, %p3267_p10 }
 0xddd   : > { %p3111_p6 = scmp.eq.s32.totalorder %s3975_s0, 1 }
 0xddf   : > { %p3262_p8 = pnand %p3261_p7, %p3111_p6 }
 0xde1   : > { %p3263_p9 = pneg %p3262_p8 }
 0xde3   : > { %p3270_p13 = pnand %p3269_p12, %p3263_p9 }
 0xde5   : > { %3273 = shalt.err (!%p3270_p13)
}
 0xde6   : > { %s3976_s18 = sld [smem:[#allocation20_spill]] }
 0xdec   : > { %s3274_s24 = scalar_lea.hbm %s3976_s18, 256 }
 0xded   : > { %p3275_p0 = scmp.ne.s32.totalorder %s3976_s18, %s3274_s24  ;;  %p3280_p3 = scmp.lt.u32.totalorder %s3274_s24, %s3976_s18 }
 0xdef   : > { %p3276_p1 = pnand %p3275_p0, %p3111_p6 }
 0xdf1   : > { %p3277_p2 = pneg %p3276_p1 }
 0xdf3   : > { %p3282_p4 = pnand %p3280_p3, %p3277_p2 }
 0xdf5   : > { %3285 = shalt.err (!%p3282_p4)
}
 0xdf6   : > { %s3314_s23 = smov 128  }
 0xdf7   : > { %3108 = dma.vmem_to_hbm [thread:$0]  (%p3111_p6), %s2635_s4, 256, %s3976_s18, [#allocation4], %s3314_s23, %s3314_s23, %s3308_s1  }
 0xdf8   : > { %3291 = dma.done.wait (%p3111_p6), [#allocation4], 256  }
 0xdf9   : > { %3293 = vsyncadd (%p3111_p6), [#allocation4], 4294967040 }
 0xdfa PF: > { %s3977_s5 = sld [smem:[#allocation6_spill]] }
 0xe00   : > { %s36_s29 = sadd.s32 1, %s3977_s5  }
 0xe01   : > { %p33_p5 = scmp.ge.s32.totalorder %s36_s29, 4  }
 0xe03   :  { %35 = sbr.rel (!%p33_p5) target bundleno = 15 (0xf), region = 188 }
 0xe0a   :  { %2667 = vsyncpa [#allocation4], 1 }
 0xe0b   :  { %2669 = vsyncpa [#allocation4 + $0x1], 1 }

</bundles_post_ra>
